<compile_context>
chip_gen: v6e
topology: v6e:2x2x1
jax: 0.10.0
libtpu: 0.0.40
codegen_flags: <defaults>
</compile_context>

<pallas_src>
import jax
import jax.numpy as jnp
from jax.experimental import pallas as pl
from jax.experimental.pallas import tpu as pltpu

_LANE = 128     # TPU lane width
_SUBLANE = 8    # f32 sublane height


def _round_up(x, m):
    return ((x + m - 1) // m) * m


def _vmem_capacity_bytes():
    try:
        return int(pltpu.get_tpu_info().vmem_capacity_bytes)
    except Exception:
        return 64 * 1024 * 1024  # smallest per-TC VMEM across v5e/v6e/v7x


def _iib_kernel(x_ref, c_ref,
                we_ref, be_ref,            # W_emb:  (d_pad, h_pad), (1, h_pad)
                wc_ref, bc_ref,            # W_cov:  (c_pad, h_pad), (1, h_pad)
                w1a_ref, w1b_ref, b1_ref,  # ffn.linear1 split: 2x (h_pad, h_pad), (1, h_pad)
                w2_ref, b2_ref,            # ffn.linear2: (h_pad, d_pad), (1, d_pad)
                o_ref):
    """One (tile_rows, d_pad) row-tile of the fused forward pass."""
    wd = we_ref.dtype                      # MXU operand dtype (f32 or bf16)
    x = x_ref[...]
    xw = x.astype(wd)
    cw = c_ref[...].astype(wd)

    # emb / cov projections: f32 accumulation, bias+ReLU in f32 on the VPU.
    h_emb = jnp.maximum(
        jnp.dot(xw, we_ref[...], preferred_element_type=jnp.float32)
        + be_ref[...].astype(jnp.float32), 0.0)
    h_cov = jnp.maximum(
        jnp.dot(cw, wc_ref[...], preferred_element_type=jnp.float32)
        + bc_ref[...].astype(jnp.float32), 0.0)

    # concat([h_emb, h_cov]) @ W1 == h_emb @ W1a + h_cov @ W1b (concat folded away)
    h1 = (jnp.dot(h_emb.astype(wd), w1a_ref[...], preferred_element_type=jnp.float32)
          + jnp.dot(h_cov.astype(wd), w1b_ref[...], preferred_element_type=jnp.float32)
          + b1_ref[...].astype(jnp.float32))
    h1 = jnp.maximum(h1, 0.0)

    adj = (jnp.dot(h1.astype(wd), w2_ref[...], preferred_element_type=jnp.float32)
           + b2_ref[...].astype(jnp.float32))

    # residual connection in f32 (exact x, not the MXU-cast copy), single cast on store
    o_ref[...] = (x.astype(jnp.float32) + adj).astype(o_ref.dtype)


def pad_params(params, *, dtype=None):
    """Zero-pad every feature dim to a multiple of 128 (and optionally cast).

    Call this ONCE outside the inference loop; padding per call would re-read
    and re-write every weight in HBM on every step.  Pads are exact: pad
    columns of W2/b2 are zero, so padded output columns are zero.
    """
    d_model = params["W_emb"].shape[0]
    cov_dim = params["W_cov"].shape[0]
    hidden = params["b_emb"].shape[-1]
    d_pad = _round_up(d_model, _LANE)
    c_pad = _round_up(cov_dim, _LANE)
    h_pad = _round_up(hidden, _LANE)

    def p2(a, rows, cols):
        a = jnp.asarray(a)
        if dtype is not None:
            a = a.astype(dtype)
        if a.shape == (rows, cols):
            return a
        return jnp.pad(a, ((0, rows - a.shape[0]), (0, cols - a.shape[1])))

    return {
        "W_emb": p2(params["W_emb"], d_pad, h_pad),
        "b_emb": p2(params["b_emb"], 1, h_pad),
        "W_cov": p2(params["W_cov"], c_pad, h_pad),
        "b_cov": p2(params["b_cov"], 1, h_pad),
        "W1a":   p2(params["W1a"], h_pad, h_pad),
        "W1b":   p2(params["W1b"], h_pad, h_pad),
        "b1":    p2(params["b1"], 1, h_pad),
        "W2":    p2(params["W2"], h_pad, d_pad),
        "b2":    p2(params["b2"], 1, d_pad),
    }


def input_injection_block(token_embeddings, past_covariates, params, *,
                          tile_rows=256, single_buffer_weights=True,
                          vmem_limit_bytes=None):
    """token_embeddings: [B, S, d_model]; past_covariates: [B, S, cov_dim] or None.

    `params` should be the output of pad_params() (pre-padded, optionally bf16);
    raw params are padded lazily as a convenience (slow path).
    """
    if past_covariates is None:
        return token_embeddings

    # Mirror the PyTorch length-trimming behavior (host-side glue).
    if token_embeddings.shape[1] != past_covariates.shape[1]:
        min_len = min(token_embeddings.shape[1], past_covariates.shape[1])
        token_embeddings = token_embeddings[:, :min_len]
        past_covariates = past_covariates[:, :min_len]

    B, S, d_model = token_embeddings.shape
    cov_dim = past_covariates.shape[-1]

    d_pad = _round_up(d_model, _LANE)
    c_pad = _round_up(cov_dim, _LANE)
    if (params["W_emb"].shape[0] != d_pad or params["W_cov"].shape[0] != c_pad
            or params["b_emb"].shape[-1] % _LANE != 0):
        params = pad_params(params)            # slow path; pre-pad outside the loop
    h_pad = params["b_emb"].shape[-1]

    # ---- row tiling: large tiles amortize per-step overhead, but keep >= 2
    # grid steps (when B*S > 8) so the "parallel" axis shards across both
    # v7x TensorCores.  Rows are zero-padded up to a tile multiple; padded
    # rows compute relu(b)@... garbage that is sliced off below.
    N = B * S
    n8 = _round_up(N, _SUBLANE)
    tm = max(_SUBLANE, min(int(tile_rows), n8))
    if n8 > _SUBLANE and n8 // tm < 2:
        tm = _round_up(-(-n8 // 2), _SUBLANE)   # ceil(n8/2), sublane-aligned
    tm = _round_up(tm, _SUBLANE)
    n_pad = _round_up(N, tm)
    grid = (n_pad // tm,)

    x = token_embeddings.reshape(N, d_model)
    c = past_covariates.reshape(N, cov_dim)
    if (n_pad, d_pad) != (N, d_model):
        x = jnp.pad(x, ((0, n_pad - N), (0, d_pad - d_model)))
    if (n_pad, c_pad) != (N, cov_dim):
        c = jnp.pad(c, ((0, n_pad - N), (0, c_pad - cov_dim)))

    weights = (params["W_emb"], params["b_emb"], params["W_cov"], params["b_cov"],
               params["W1a"], params["W1b"], params["b1"], params["W2"], params["b2"])

    # ---- explicit VMEM budget: weights x 2 bufs (upper bound, covers the
    # double-buffered fallback) + double-buffered x/c/out tiles + f32 temps.
    if vmem_limit_bytes is None:
        w_bytes = 2 * sum(int(w.size) * w.dtype.itemsize for w in weights)
        act_bytes = 2 * tm * (2 * d_pad + c_pad) * x.dtype.itemsize
        tmp_bytes = (3 * tm * h_pad + 2 * tm * d_pad) * 4
        vmem_limit_bytes = int(1.5 * (w_bytes + act_bytes + tmp_bytes)) + (2 << 20)
        vmem_limit_bytes = max(vmem_limit_bytes, 32 << 20)
        vmem_limit_bytes = min(vmem_limit_bytes, _vmem_capacity_bytes())

    row_spec = lambda feat: pl.BlockSpec((tm, feat), lambda i: (i, 0))

    def _call(single_buffer):
        mode = {"pipeline_mode": pl.Buffered(1)} if single_buffer else {}
        const_spec = lambda r, col: pl.BlockSpec((r, col), lambda i: (0, 0), **mode)
        return pl.pallas_call(
            _iib_kernel,
            out_shape=jax.ShapeDtypeStruct((n_pad, d_pad), token_embeddings.dtype),
            grid_spec=pltpu.PrefetchScalarGridSpec(
                num_scalar_prefetch=0,
                grid=grid,
                in_specs=[
                    row_spec(d_pad),                 # x tile
                    row_spec(c_pad),                 # cov tile
                    const_spec(d_pad, h_pad),        # W_emb
                    const_spec(1, h_pad),            # b_emb
                    const_spec(c_pad, h_pad),        # W_cov
                    const_spec(1, h_pad),            # b_cov
                    const_spec(h_pad, h_pad),        # W1a (emb half of ffn.linear1)
                    const_spec(h_pad, h_pad),        # W1b (cov half of ffn.linear1)
                    const_spec(1, h_pad),            # b1
                    const_spec(h_pad, d_pad),        # W2
                    const_spec(1, d_pad),            # b2
                ],
                out_specs=row_spec(d_pad),
            ),
            compiler_params=pltpu.CompilerParams(
                dimension_semantics=("parallel",),
                vmem_limit_bytes=int(vmem_limit_bytes)),
        )(x, c, *weights)

    if single_buffer_weights:
        try:
            out = _call(True)
        except Exception:
            # TODO(synk): pipeline_mode=pl.Buffered(1) not accepted on this jax
            # build; fall back to default double-buffered weight blocks.
            out = _call(False)
    else:
        out = _call(False)

    if (n_pad, d_pad) != (N, d_model):
        out = out[:N, :d_model]
    return out.reshape(B, S, d_model)


def init_params(key, d_model, cov_dim, hidden_dim, dtype=jnp.float32):
    """Deterministic synthetic parameters.

    Weights are stored already-transposed relative to nn.Linear, i.e.
    shape (in_features, out_features), so the kernel does x @ W + b.
    Pass dtype=jnp.bfloat16 (or cast via pad_params(..., dtype=bf16)) for the
    bf16 MXU fast path; f32 accumulation is kept either way.
    """
    ks = jax.random.split(key, 8)
    scale = 0.05
    W_emb = scale * jax.random.normal(ks[0], (d_model, hidden_dim), jnp.float32)
    b_emb = scale * jax.random.normal(ks[1], (1, hidden_dim), jnp.float32)
    W_cov = scale * jax.random.normal(ks[2], (cov_dim, hidden_dim), jnp.float32)
    b_cov = scale * jax.random.normal(ks[3], (1, hidden_dim), jnp.float32)
    # ffn.linear1: (2H -> H), split into the emb half and the cov half so the
    # kernel never materializes the concat.
    W1 = scale * jax.random.normal(ks[4], (2 * hidden_dim, hidden_dim), jnp.float32)
    b1 = scale * jax.random.normal(ks[5], (1, hidden_dim), jnp.float32)
    W2 = scale * jax.random.normal(ks[6], (hidden_dim, d_model), jnp.float32)
    b2 = scale * jax.random.normal(ks[7], (1, d_model), jnp.float32)
    p = {
        "W_emb": W_emb, "b_emb": b_emb,
        "W_cov": W_cov, "b_cov": b_cov,
        "W1a": W1[:hidden_dim], "W1b": W1[hidden_dim:], "b1": b1,
        "W2": W2, "b2": b2,
    }
    return {k: v.astype(dtype) for k, v in p.items()}


def _reference(token_embeddings, past_covariates, params):
    """Pure-JAX f32 reference of the PyTorch forward pass (for verification)."""
    f32 = lambda a: a.astype(jnp.float32)
    h_emb = jnp.maximum(token_embeddings @ f32(params["W_emb"]) + f32(params["b_emb"]), 0.0)
    h_cov = jnp.maximum(past_covariates @ f32(params["W_cov"]) + f32(params["b_cov"]), 0.0)
    cat = jnp.concatenate([h_emb, h_cov], axis=-1)
    W1 = jnp.concatenate([f32(params["W1a"]), f32(params["W1b"])], axis=0)
    h1 = jnp.maximum(cat @ W1 + f32(params["b1"]), 0.0)
    adj = h1 @ f32(params["W2"]) + f32(params["b2"])
    return token_embeddings + adj


if __name__ == "__main__":
    B, S = 2, 8
    d_model, cov_dim, hidden_dim = 32, 16, 64

    key = jax.random.PRNGKey(0)
    k_tok, k_cov, k_par = jax.random.split(key, 3)
    token_embeddings = jax.random.normal(k_tok, (B, S, d_model), jnp.float32)
    past_covariates = jax.random.normal(k_cov, (B, S, cov_dim), jnp.float32)

    raw_params = init_params(k_par, d_model, cov_dim, hidden_dim)   # f32 weights
    params = pad_params(raw_params)                                 # pad ONCE, outside hot path

    out = jax.block_until_ready(
        input_injection_block(token_embeddings, past_covariates, params))
    ref = _reference(token_embeddings, past_covariates, raw_params)
    assert out.shape == (B, S, d_model)
    assert jnp.allclose(out, ref, atol=1e-4, rtol=1e-4)

    # Second shape: B*S not a multiple of the row tile -> exercises row padding + slice.
    S2 = 13
    te2 = jax.random.normal(jax.random.PRNGKey(1), (B, S2, d_model), jnp.float32)
    pc2 = jax.random.normal(jax.random.PRNGKey(2), (B, S2, cov_dim), jnp.float32)
    out2 = jax.block_until_ready(input_injection_block(te2, pc2, params))
    ref2 = _reference(te2, pc2, raw_params)
    assert jnp.allclose(out2, ref2, atol=1e-4, rtol=1e-4)

    # bf16-weight fast path (deliberate bf16 MXU precision) vs. the f32 reference:
    # residual is exact (f32 x), only the small `adj` term carries bf16 error.
    params_bf16 = pad_params(raw_params, dtype=jnp.bfloat16)
    out3 = jax.block_until_ready(
        input_injection_block(token_embeddings, past_covariates, params_bf16))
    assert jnp.allclose(out3, ref, atol=5e-2, rtol=5e-2)

    print("KERNEL_OK")
</pallas_src>

<mosaic_0001>
module attributes {stable_mosaic.version = 11 : i64} {
  func.func @_iib_kernel(%arg0: i32, %arg1: memref<8x128xf32, #tpu.memory_space<vmem>>, %arg2: memref<8x128xf32, #tpu.memory_space<vmem>>, %arg3: memref<128x128xf32, #tpu.memory_space<vmem>>, %arg4: memref<1x128xf32, #tpu.memory_space<vmem>>, %arg5: memref<128x128xf32, #tpu.memory_space<vmem>>, %arg6: memref<1x128xf32, #tpu.memory_space<vmem>>, %arg7: memref<128x128xf32, #tpu.memory_space<vmem>>, %arg8: memref<128x128xf32, #tpu.memory_space<vmem>>, %arg9: memref<1x128xf32, #tpu.memory_space<vmem>>, %arg10: memref<128x128xf32, #tpu.memory_space<vmem>>, %arg11: memref<1x128xf32, #tpu.memory_space<vmem>>, %arg12: memref<8x128xf32, #tpu.memory_space<vmem>>) attributes {dimension_semantics = [#tpu.dimension_semantics<parallel>], iteration_bounds = array<i64: 2>, scalar_prefetch = 0 : i64, scratch_operands = 0 : i64, tpu.core_type = #tpu.core_type<tc>, window_params = [{transform_indices = @transform_0, window_bounds = array<i64: 8, 128>}, {transform_indices = @transform_1, window_bounds = array<i64: 8, 128>}, {pipeline_mode = #tpu.pipeline_mode<synchronous>, transform_indices = @transform_2, window_bounds = array<i64: 128, 128>}, {pipeline_mode = #tpu.pipeline_mode<synchronous>, transform_indices = @transform_3, window_bounds = array<i64: 1, 128>}, {pipeline_mode = #tpu.pipeline_mode<synchronous>, transform_indices = @transform_4, window_bounds = array<i64: 128, 128>}, {pipeline_mode = #tpu.pipeline_mode<synchronous>, transform_indices = @transform_5, window_bounds = array<i64: 1, 128>}, {pipeline_mode = #tpu.pipeline_mode<synchronous>, transform_indices = @transform_6, window_bounds = array<i64: 128, 128>}, {pipeline_mode = #tpu.pipeline_mode<synchronous>, transform_indices = @transform_7, window_bounds = array<i64: 128, 128>}, {pipeline_mode = #tpu.pipeline_mode<synchronous>, transform_indices = @transform_8, window_bounds = array<i64: 1, 128>}, {pipeline_mode = #tpu.pipeline_mode<synchronous>, transform_indices = @transform_9, window_bounds = array<i64: 128, 128>}, {pipeline_mode = #tpu.pipeline_mode<synchronous>, transform_indices = @transform_10, window_bounds = array<i64: 1, 128>}, {transform_indices = @transform_11, window_bounds = array<i64: 8, 128>}]} {
    %c0 = arith.constant 0 : index
    %c0_0 = arith.constant 0 : index
    %0 = vector.load %arg1[%c0, %c0_0] : memref<8x128xf32, #tpu.memory_space<vmem>>, vector<8x128xf32>
    %c0_1 = arith.constant 0 : index
    %c0_2 = arith.constant 0 : index
    %1 = vector.load %arg2[%c0_1, %c0_2] : memref<8x128xf32, #tpu.memory_space<vmem>>, vector<8x128xf32>
    %c0_3 = arith.constant 0 : index
    %c0_4 = arith.constant 0 : index
    %2 = vector.load %arg3[%c0_3, %c0_4] : memref<128x128xf32, #tpu.memory_space<vmem>>, vector<128x128xf32>
    %cst = arith.constant dense<0.000000e+00> : vector<8x128xf32>
    %3 = tpu.matmul %0, %2, %cst {dimension_numbers = #tpu.dot_dimension_numbers<[1], [0], [0], [1], [0, 0, 1, 1], [], []>} : vector<8x128xf32>, vector<128x128xf32>, vector<8x128xf32> -> vector<8x128xf32>
    %c0_5 = arith.constant 0 : index
    %c0_6 = arith.constant 0 : index
    %4 = vector.load %arg4[%c0_5, %c0_6] : memref<1x128xf32, #tpu.memory_space<vmem>>, vector<1x128xf32>
    %5 = vector.broadcast %4 : vector<1x128xf32> to vector<8x128xf32>
    %6 = arith.addf %3, %5 : vector<8x128xf32>
    %cst_7 = arith.constant 0.000000e+00 : f32
    %7 = vector.broadcast %cst_7 : f32 to vector<8x128xf32>
    %8 = arith.maximumf %6, %7 : vector<8x128xf32>
    %c0_8 = arith.constant 0 : index
    %c0_9 = arith.constant 0 : index
    %9 = vector.load %arg5[%c0_8, %c0_9] : memref<128x128xf32, #tpu.memory_space<vmem>>, vector<128x128xf32>
    %cst_10 = arith.constant dense<0.000000e+00> : vector<8x128xf32>
    %10 = tpu.matmul %1, %9, %cst_10 {dimension_numbers = #tpu.dot_dimension_numbers<[1], [0], [0], [1], [0, 0, 1, 1], [], []>} : vector<8x128xf32>, vector<128x128xf32>, vector<8x128xf32> -> vector<8x128xf32>
    %c0_11 = arith.constant 0 : index
    %c0_12 = arith.constant 0 : index
    %11 = vector.load %arg6[%c0_11, %c0_12] : memref<1x128xf32, #tpu.memory_space<vmem>>, vector<1x128xf32>
    %12 = vector.broadcast %11 : vector<1x128xf32> to vector<8x128xf32>
    %13 = arith.addf %10, %12 : vector<8x128xf32>
    %cst_13 = arith.constant 0.000000e+00 : f32
    %14 = vector.broadcast %cst_13 : f32 to vector<8x128xf32>
    %15 = arith.maximumf %13, %14 : vector<8x128xf32>
    %c0_14 = arith.constant 0 : index
    %c0_15 = arith.constant 0 : index
    %16 = vector.load %arg7[%c0_14, %c0_15] : memref<128x128xf32, #tpu.memory_space<vmem>>, vector<128x128xf32>
    %cst_16 = arith.constant dense<0.000000e+00> : vector<8x128xf32>
    %17 = tpu.matmul %8, %16, %cst_16 {dimension_numbers = #tpu.dot_dimension_numbers<[1], [0], [0], [1], [0, 0, 1, 1], [], []>} : vector<8x128xf32>, vector<128x128xf32>, vector<8x128xf32> -> vector<8x128xf32>
    %c0_17 = arith.constant 0 : index
    %c0_18 = arith.constant 0 : index
    %18 = vector.load %arg8[%c0_17, %c0_18] : memref<128x128xf32, #tpu.memory_space<vmem>>, vector<128x128xf32>
    %cst_19 = arith.constant dense<0.000000e+00> : vector<8x128xf32>
    %19 = tpu.matmul %15, %18, %cst_19 {dimension_numbers = #tpu.dot_dimension_numbers<[1], [0], [0], [1], [0, 0, 1, 1], [], []>} : vector<8x128xf32>, vector<128x128xf32>, vector<8x128xf32> -> vector<8x128xf32>
    %20 = arith.addf %17, %19 : vector<8x128xf32>
    %c0_20 = arith.constant 0 : index
    %c0_21 = arith.constant 0 : index
    %21 = vector.load %arg9[%c0_20, %c0_21] : memref<1x128xf32, #tpu.memory_space<vmem>>, vector<1x128xf32>
    %22 = vector.broadcast %21 : vector<1x128xf32> to vector<8x128xf32>
    %23 = arith.addf %20, %22 : vector<8x128xf32>
    %cst_22 = arith.constant 0.000000e+00 : f32
    %24 = vector.broadcast %cst_22 : f32 to vector<8x128xf32>
    %25 = arith.maximumf %23, %24 : vector<8x128xf32>
    %c0_23 = arith.constant 0 : index
    %c0_24 = arith.constant 0 : index
    %26 = vector.load %arg10[%c0_23, %c0_24] : memref<128x128xf32, #tpu.memory_space<vmem>>, vector<128x128xf32>
    %cst_25 = arith.constant dense<0.000000e+00> : vector<8x128xf32>
    %27 = tpu.matmul %25, %26, %cst_25 {dimension_numbers = #tpu.dot_dimension_numbers<[1], [0], [0], [1], [0, 0, 1, 1], [], []>} : vector<8x128xf32>, vector<128x128xf32>, vector<8x128xf32> -> vector<8x128xf32>
    %c0_26 = arith.constant 0 : index
    %c0_27 = arith.constant 0 : index
    %28 = vector.load %arg11[%c0_26, %c0_27] : memref<1x128xf32, #tpu.memory_space<vmem>>, vector<1x128xf32>
    %29 = vector.broadcast %28 : vector<1x128xf32> to vector<8x128xf32>
    %30 = arith.addf %27, %29 : vector<8x128xf32>
    %31 = arith.addf %0, %30 : vector<8x128xf32>
    %c0_28 = arith.constant 0 : index
    %c0_29 = arith.constant 0 : index
    %32 = vector.load %arg12[%c0_28, %c0_29] : memref<8x128xf32, #tpu.memory_space<vmem>>, vector<8x128xf32>
    tpu.vector_store %arg12[%c0_28, %c0_29], %31 {strides = array<i32>} : memref<8x128xf32, #tpu.memory_space<vmem>>, vector<8x128xf32>,
    return
  }
  func.func @transform_0(%arg0: i32) -> (i32, i32) {
    %c0_i32 = arith.constant 0 : i32
    %c0_i32_0 = arith.constant 0 : i32
    return %arg0, %c0_i32 : i32, i32
  }
  func.func @transform_1(%arg0: i32) -> (i32, i32) {
    %c0_i32 = arith.constant 0 : i32
    %c0_i32_0 = arith.constant 0 : i32
    return %arg0, %c0_i32 : i32, i32
  }
  func.func @transform_2(%arg0: i32) -> (i32, i32) {
    %c0_i32 = arith.constant 0 : i32
    %c0_i32_0 = arith.constant 0 : i32
    %c0_i32_1 = arith.constant 0 : i32
    return %c0_i32, %c0_i32_0 : i32, i32
  }
  func.func @transform_3(%arg0: i32) -> (i32, i32) {
    %c0_i32 = arith.constant 0 : i32
    %c0_i32_0 = arith.constant 0 : i32
    %c0_i32_1 = arith.constant 0 : i32
    return %c0_i32, %c0_i32_0 : i32, i32
  }
  func.func @transform_4(%arg0: i32) -> (i32, i32) {
    %c0_i32 = arith.constant 0 : i32
    %c0_i32_0 = arith.constant 0 : i32
    %c0_i32_1 = arith.constant 0 : i32
    return %c0_i32, %c0_i32_0 : i32, i32
  }
  func.func @transform_5(%arg0: i32) -> (i32, i32) {
    %c0_i32 = arith.constant 0 : i32
    %c0_i32_0 = arith.constant 0 : i32
    %c0_i32_1 = arith.constant 0 : i32
    return %c0_i32, %c0_i32_0 : i32, i32
  }
  func.func @transform_6(%arg0: i32) -> (i32, i32) {
    %c0_i32 = arith.constant 0 : i32
    %c0_i32_0 = arith.constant 0 : i32
    %c0_i32_1 = arith.constant 0 : i32
    return %c0_i32, %c0_i32_0 : i32, i32
  }
  func.func @transform_7(%arg0: i32) -> (i32, i32) {
    %c0_i32 = arith.constant 0 : i32
    %c0_i32_0 = arith.constant 0 : i32
    %c0_i32_1 = arith.constant 0 : i32
    return %c0_i32, %c0_i32_0 : i32, i32
  }
  func.func @transform_8(%arg0: i32) -> (i32, i32) {
    %c0_i32 = arith.constant 0 : i32
    %c0_i32_0 = arith.constant 0 : i32
    %c0_i32_1 = arith.constant 0 : i32
    return %c0_i32, %c0_i32_0 : i32, i32
  }
  func.func @transform_9(%arg0: i32) -> (i32, i32) {
    %c0_i32 = arith.constant 0 : i32
    %c0_i32_0 = arith.constant 0 : i32
    %c0_i32_1 = arith.constant 0 : i32
    return %c0_i32, %c0_i32_0 : i32, i32
  }
  func.func @transform_10(%arg0: i32) -> (i32, i32) {
    %c0_i32 = arith.constant 0 : i32
    %c0_i32_0 = arith.constant 0 : i32
    %c0_i32_1 = arith.constant 0 : i32
    return %c0_i32, %c0_i32_0 : i32, i32
  }
  func.func @transform_11(%arg0: i32) -> (i32, i32) {
    %c0_i32 = arith.constant 0 : i32
    %c0_i32_0 = arith.constant 0 : i32
    return %arg0, %c0_i32 : i32, i32
  }
}

module attributes {stable_mosaic.version = 11 : i64} {
  func.func @_iib_kernel(%arg0: i32, %arg1: memref<8x128xf32, #tpu.memory_space<vmem>>, %arg2: memref<8x128xf32, #tpu.memory_space<vmem>>, %arg3: memref<128x128xf32, #tpu.memory_space<vmem>>, %arg4: memref<1x128xf32, #tpu.memory_space<vmem>>, %arg5: memref<128x128xf32, #tpu.memory_space<vmem>>, %arg6: memref<1x128xf32, #tpu.memory_space<vmem>>, %arg7: memref<128x128xf32, #tpu.memory_space<vmem>>, %arg8: memref<128x128xf32, #tpu.memory_space<vmem>>, %arg9: memref<1x128xf32, #tpu.memory_space<vmem>>, %arg10: memref<128x128xf32, #tpu.memory_space<vmem>>, %arg11: memref<1x128xf32, #tpu.memory_space<vmem>>, %arg12: memref<8x128xf32, #tpu.memory_space<vmem>>) attributes {dimension_semantics = [#tpu.dimension_semantics<parallel>], iteration_bounds = array<i64: 2>, scalar_prefetch = 0 : i64, scratch_operands = 0 : i64, tpu.core_type = #tpu.core_type<tc>, window_params = [{transform_indices = @transform_0, window_bounds = array<i64: 8, 128>}, {transform_indices = @transform_1, window_bounds = array<i64: 8, 128>}, {pipeline_mode = #tpu.pipeline_mode<synchronous>, transform_indices = @transform_2, window_bounds = array<i64: 128, 128>}, {pipeline_mode = #tpu.pipeline_mode<synchronous>, transform_indices = @transform_3, window_bounds = array<i64: 1, 128>}, {pipeline_mode = #tpu.pipeline_mode<synchronous>, transform_indices = @transform_4, window_bounds = array<i64: 128, 128>}, {pipeline_mode = #tpu.pipeline_mode<synchronous>, transform_indices = @transform_5, window_bounds = array<i64: 1, 128>}, {pipeline_mode = #tpu.pipeline_mode<synchronous>, transform_indices = @transform_6, window_bounds = array<i64: 128, 128>}, {pipeline_mode = #tpu.pipeline_mode<synchronous>, transform_indices = @transform_7, window_bounds = array<i64: 128, 128>}, {pipeline_mode = #tpu.pipeline_mode<synchronous>, transform_indices = @transform_8, window_bounds = array<i64: 1, 128>}, {pipeline_mode = #tpu.pipeline_mode<synchronous>, transform_indices = @transform_9, window_bounds = array<i64: 128, 128>}, {pipeline_mode = #tpu.pipeline_mode<synchronous>, transform_indices = @transform_10, window_bounds = array<i64: 1, 128>}, {transform_indices = @transform_11, window_bounds = array<i64: 8, 128>}]} {
    %c0 = arith.constant 0 : index
    %c0_0 = arith.constant 0 : index
    %0 = vector.load %arg1[%c0, %c0_0] : memref<8x128xf32, #tpu.memory_space<vmem>>, vector<8x128xf32>
    %c0_1 = arith.constant 0 : index
    %c0_2 = arith.constant 0 : index
    %1 = vector.load %arg2[%c0_1, %c0_2] : memref<8x128xf32, #tpu.memory_space<vmem>>, vector<8x128xf32>
    %c0_3 = arith.constant 0 : index
    %c0_4 = arith.constant 0 : index
    %2 = vector.load %arg3[%c0_3, %c0_4] : memref<128x128xf32, #tpu.memory_space<vmem>>, vector<128x128xf32>
    %cst = arith.constant dense<0.000000e+00> : vector<8x128xf32>
    %3 = tpu.matmul %0, %2, %cst {dimension_numbers = #tpu.dot_dimension_numbers<[1], [0], [0], [1], [0, 0, 1, 1], [], []>} : vector<8x128xf32>, vector<128x128xf32>, vector<8x128xf32> -> vector<8x128xf32>
    %c0_5 = arith.constant 0 : index
    %c0_6 = arith.constant 0 : index
    %4 = vector.load %arg4[%c0_5, %c0_6] : memref<1x128xf32, #tpu.memory_space<vmem>>, vector<1x128xf32>
    %5 = vector.broadcast %4 : vector<1x128xf32> to vector<8x128xf32>
    %6 = arith.addf %3, %5 : vector<8x128xf32>
    %cst_7 = arith.constant 0.000000e+00 : f32
    %7 = vector.broadcast %cst_7 : f32 to vector<8x128xf32>
    %8 = arith.maximumf %6, %7 : vector<8x128xf32>
    %c0_8 = arith.constant 0 : index
    %c0_9 = arith.constant 0 : index
    %9 = vector.load %arg5[%c0_8, %c0_9] : memref<128x128xf32, #tpu.memory_space<vmem>>, vector<128x128xf32>
    %cst_10 = arith.constant dense<0.000000e+00> : vector<8x128xf32>
    %10 = tpu.matmul %1, %9, %cst_10 {dimension_numbers = #tpu.dot_dimension_numbers<[1], [0], [0], [1], [0, 0, 1, 1], [], []>} : vector<8x128xf32>, vector<128x128xf32>, vector<8x128xf32> -> vector<8x128xf32>
    %c0_11 = arith.constant 0 : index
    %c0_12 = arith.constant 0 : index
    %11 = vector.load %arg6[%c0_11, %c0_12] : memref<1x128xf32, #tpu.memory_space<vmem>>, vector<1x128xf32>
    %12 = vector.broadcast %11 : vector<1x128xf32> to vector<8x128xf32>
    %13 = arith.addf %10, %12 : vector<8x128xf32>
    %cst_13 = arith.constant 0.000000e+00 : f32
    %14 = vector.broadcast %cst_13 : f32 to vector<8x128xf32>
    %15 = arith.maximumf %13, %14 : vector<8x128xf32>
    %c0_14 = arith.constant 0 : index
    %c0_15 = arith.constant 0 : index
    %16 = vector.load %arg7[%c0_14, %c0_15] : memref<128x128xf32, #tpu.memory_space<vmem>>, vector<128x128xf32>
    %cst_16 = arith.constant dense<0.000000e+00> : vector<8x128xf32>
    %17 = tpu.matmul %8, %16, %cst_16 {dimension_numbers = #tpu.dot_dimension_numbers<[1], [0], [0], [1], [0, 0, 1, 1], [], []>} : vector<8x128xf32>, vector<128x128xf32>, vector<8x128xf32> -> vector<8x128xf32>
    %c0_17 = arith.constant 0 : index
    %c0_18 = arith.constant 0 : index
    %18 = vector.load %arg8[%c0_17, %c0_18] : memref<128x128xf32, #tpu.memory_space<vmem>>, vector<128x128xf32>
    %cst_19 = arith.constant dense<0.000000e+00> : vector<8x128xf32>
    %19 = tpu.matmul %15, %18, %cst_19 {dimension_numbers = #tpu.dot_dimension_numbers<[1], [0], [0], [1], [0, 0, 1, 1], [], []>} : vector<8x128xf32>, vector<128x128xf32>, vector<8x128xf32> -> vector<8x128xf32>
    %20 = arith.addf %17, %19 : vector<8x128xf32>
    %c0_20 = arith.constant 0 : index
    %c0_21 = arith.constant 0 : index
    %21 = vector.load %arg9[%c0_20, %c0_21] : memref<1x128xf32, #tpu.memory_space<vmem>>, vector<1x128xf32>
    %22 = vector.broadcast %21 : vector<1x128xf32> to vector<8x128xf32>
    %23 = arith.addf %20, %22 : vector<8x128xf32>
    %cst_22 = arith.constant 0.000000e+00 : f32
    %24 = vector.broadcast %cst_22 : f32 to vector<8x128xf32>
    %25 = arith.maximumf %23, %24 : vector<8x128xf32>
    %c0_23 = arith.constant 0 : index
    %c0_24 = arith.constant 0 : index
    %26 = vector.load %arg10[%c0_23, %c0_24] : memref<128x128xf32, #tpu.memory_space<vmem>>, vector<128x128xf32>
    %cst_25 = arith.constant dense<0.000000e+00> : vector<8x128xf32>
    %27 = tpu.matmul %25, %26, %cst_25 {dimension_numbers = #tpu.dot_dimension_numbers<[1], [0], [0], [1], [0, 0, 1, 1], [], []>} : vector<8x128xf32>, vector<128x128xf32>, vector<8x128xf32> -> vector<8x128xf32>
    %c0_26 = arith.constant 0 : index
    %c0_27 = arith.constant 0 : index
    %28 = vector.load %arg11[%c0_26, %c0_27] : memref<1x128xf32, #tpu.memory_space<vmem>>, vector<1x128xf32>
    %29 = vector.broadcast %28 : vector<1x128xf32> to vector<8x128xf32>
    %30 = arith.addf %27, %29 : vector<8x128xf32>
    %31 = arith.addf %0, %30 : vector<8x128xf32>
    %c0_28 = arith.constant 0 : index
    %c0_29 = arith.constant 0 : index
    %32 = vector.load %arg12[%c0_28, %c0_29] : memref<8x128xf32, #tpu.memory_space<vmem>>, vector<8x128xf32>
    tpu.vector_store %arg12[%c0_28, %c0_29], %31 {strides = array<i32>} : memref<8x128xf32, #tpu.memory_space<vmem>>, vector<8x128xf32>,
    return
  }
  func.func @transform_0(%arg0: i32) -> (i32, i32) {
    %c0_i32 = arith.constant 0 : i32
    %c0_i32_0 = arith.constant 0 : i32
    return %arg0, %c0_i32 : i32, i32
  }
  func.func @transform_1(%arg0: i32) -> (i32, i32) {
    %c0_i32 = arith.constant 0 : i32
    %c0_i32_0 = arith.constant 0 : i32
    return %arg0, %c0_i32 : i32, i32
  }
  func.func @transform_2(%arg0: i32) -> (i32, i32) {
    %c0_i32 = arith.constant 0 : i32
    %c0_i32_0 = arith.constant 0 : i32
    %c0_i32_1 = arith.constant 0 : i32
    return %c0_i32, %c0_i32_0 : i32, i32
  }
  func.func @transform_3(%arg0: i32) -> (i32, i32) {
    %c0_i32 = arith.constant 0 : i32
    %c0_i32_0 = arith.constant 0 : i32
    %c0_i32_1 = arith.constant 0 : i32
    return %c0_i32, %c0_i32_0 : i32, i32
  }
  func.func @transform_4(%arg0: i32) -> (i32, i32) {
    %c0_i32 = arith.constant 0 : i32
    %c0_i32_0 = arith.constant 0 : i32
    %c0_i32_1 = arith.constant 0 : i32
    return %c0_i32, %c0_i32_0 : i32, i32
  }
  func.func @transform_5(%arg0: i32) -> (i32, i32) {
    %c0_i32 = arith.constant 0 : i32
    %c0_i32_0 = arith.constant 0 : i32
    %c0_i32_1 = arith.constant 0 : i32
    return %c0_i32, %c0_i32_0 : i32, i32
  }
  func.func @transform_6(%arg0: i32) -> (i32, i32) {
    %c0_i32 = arith.constant 0 : i32
    %c0_i32_0 = arith.constant 0 : i32
    %c0_i32_1 = arith.constant 0 : i32
    return %c0_i32, %c0_i32_0 : i32, i32
  }
  func.func @transform_7(%arg0: i32) -> (i32, i32) {
    %c0_i32 = arith.constant 0 : i32
    %c0_i32_0 = arith.constant 0 : i32
    %c0_i32_1 = arith.constant 0 : i32
    return %c0_i32, %c0_i32_0 : i32, i32
  }
  func.func @transform_8(%arg0: i32) -> (i32, i32) {
    %c0_i32 = arith.constant 0 : i32
    %c0_i32_0 = arith.constant 0 : i32
    %c0_i32_1 = arith.constant 0 : i32
    return %c0_i32, %c0_i32_0 : i32, i32
  }
  func.func @transform_9(%arg0: i32) -> (i32, i32) {
    %c0_i32 = arith.constant 0 : i32
    %c0_i32_0 = arith.constant 0 : i32
    %c0_i32_1 = arith.constant 0 : i32
    return %c0_i32, %c0_i32_0 : i32, i32
  }
  func.func @transform_10(%arg0: i32) -> (i32, i32) {
    %c0_i32 = arith.constant 0 : i32
    %c0_i32_0 = arith.constant 0 : i32
    %c0_i32_1 = arith.constant 0 : i32
    return %c0_i32, %c0_i32_0 : i32, i32
  }
  func.func @transform_11(%arg0: i32) -> (i32, i32) {
    %c0_i32 = arith.constant 0 : i32
    %c0_i32_0 = arith.constant 0 : i32
    return %arg0, %c0_i32 : i32, i32
  }
}

</mosaic_0001>

<bundles_post_ra>
// kernel: tpu_custom_call.1
= control target key start
LH: loop header
LB: loop body
LE: loop exit
PB: predicated region body
PF: predicated region fallthrough
CT: control target
= control target key end

     0   :  { %s2243_s0 = inlined_call_operand.hbm [shape: f32[16,128], index: 0, kind: input, shape index: {}]   ;;  %s2244_s1 = inlined_call_operand.hbm [shape: f32[16,128], index: 1, kind: input, shape index: {}]   ;;  %s2245_s2 = inlined_call_operand.hbm [shape: f32[128,128], index: 2, kind: input, shape index: {}]   ;;  %s2246_s3 = inlined_call_operand.vmem [shape: f32[1,128], index: 3, kind: input, shape index: {}]   ;;  %s2247_s4 = inlined_call_operand.hbm [shape: f32[128,128], index: 4, kind: input, shape index: {}]   ;;  %s2248_s5 = inlined_call_operand.vmem [shape: f32[1,128], index: 5, kind: input, shape index: {}]   ;;  %s2249_s6 = inlined_call_operand.hbm [shape: f32[128,128], index: 6, kind: input, shape index: {}]   ;;  %s2250_s7 = inlined_call_operand.hbm [shape: f32[128,128], index: 7, kind: input, shape index: {}]   ;;  %s2251_s8 = inlined_call_operand.vmem [shape: f32[1,128], index: 8, kind: input, shape index: {}]   ;;  %s2252_s9 = inlined_call_operand.hbm [shape: f32[128,128], index: 9, kind: input, shape index: {}]   ;;  %s2253_s10 = inlined_call_operand.vmem [shape: f32[1,128], index: 10, kind: input, shape index: {}]   ;;  %s2254_s11 = inlined_call_operand.hbm [shape: f32[16,128], index: 11, kind: output, shape index: {}]  }
   0x1   :  { %2262 = sst [smem:[#allocation24_spill]] %s2245_s2 }
   0x2   :  { %2263 = sst [smem:[#allocation25_spill]] %s2247_s4 }
   0x3   :  { %2264 = sst [smem:[#allocation26_spill]] %s2249_s6 }
   0x4   :  { %2265 = sst [smem:[#allocation27_spill]] %s2250_s7 }
   0x5   :  { %2266 = sst [smem:[#allocation28_spill]] %s2252_s9 }
   0x6   :  { %16 = vsyncpa [#allocation3], 0 }
   0x7   :  { %18 = vsyncpa [#allocation3 + $0x1], 0 }
   0x8   :  { %19 = vsyncpa [#allocation6], 0 }
   0x9   :  { %21 = vsyncpa [#allocation6 + $0x1], 0 }
   0xa   :  { %22 = vsyncpa [#allocation9], 0 }
   0xb   :  { %23 = vsyncpa [#allocation12], 0 }
   0xc   :  { %24 = vsyncpa [#allocation4], 0 }
   0xd   :  { %26 = vsyncpa [#allocation4 + $0x1], 0  ;;  %s1866_s17 = smov 0   ;;  %s1868_s18 = smov 0  }
   0xe   :  { %s1870_s19 = smov 0   ;;  %s1872_s20 = smov 0  }
   0xf LB: > { %2267 = sst [smem:[#allocation21_spill]] %s1788_s19  ;;  %s1794_s21 = smov [#allocation7]   ;;  %s1792_s20 = sphi %s1872_s20, %s2293_s20   ;;  %s1788_s19 = sphi %s1870_s19, %s2295_s19   ;;  %s1784_s18 = sphi %s1868_s18, %s2297_s18   ;;  %s1780_s17 = sphi %s1866_s17, %s2296_s17  }
  0x10   : > { %s316_s22 = sshll.u32 %s1794_s21, 4  ;;  %s1887_s23 = sadd.s32 4294967295, %s1792_s20   ;;  %s317_s22 = int_to_ptr.vmem [resolvable:$true] %s316_s22 }
  0x11   : > { %p1132_p0 = scmp.ge.s32.totalorder %s1792_s20, 1  ;;  %p2258_p1 = scmp.eq.s32.totalorder %s1887_s23, 0 }
  0x12   : > { %p304_p2 = scmp.lt.s32.totalorder %s1792_s20, 3  ;;  %s1795_s25 = smov [#allocation8]  }
  0x13   : > { %s332_s26 = sshll.u32 %s1795_s25, 4  ;;  %s1796_s28 = smov [#allocation11]   ;;  %s1905_s26 = int_to_ptr.vmem [resolvable:$true] %s332_s26 }
  0x14   : > { %p1892_p3 = pnand %p1132_p0, %p304_p2  ;;  %s361_s29 = sshll.u32 %s1796_s28, 4  ;;  %s1907_s29 = int_to_ptr.vmem [resolvable:$true] %s361_s29 }
  0x15   : > { %s1537_s12 = scalar_lea.vmem %s317_s22, 2048  ;;  %p1545_p11 = scmp.lt.s32.totalorder %s317_s22, %s317_s22 }
  0x16   : > { %s2268_s24 = scalar_select %p1892_p3, 1, 0 }
  0x17   : > { %p1446_p5 = pneg %p1892_p3  ;;  %p1538_p8 = scmp.ne.s32.totalorder %s317_s22, %s1537_s12 }
  0x18   : > { %p1546_p12 = scmp.lt.s32.totalorder %s1537_s12, %s1537_s12 }
  0x19   : > { %p1901_p6 = pnand %p1446_p5, %p2258_p1 }
  0x1a   : > { %p1547_p13 = por %p1546_p12, %p1545_p11 }
  0x1b   : > { %p1911_p7 = pneg %p1901_p6 }
  0x1d   : > { %p1540_p9 = pnand %p1538_p8, %p1911_p7 }
  0x1f   : > { %p1541_p10 = pneg %p1540_p9 }
  0x21   : > { %p1548_p0 = pnand %p1547_p13, %p1541_p10 }
  0x23   : > { %1551 = shalt.err (!%p1548_p0)
}
  0x24   : > { %s1797_s13 = smov 128   ;;  %s1798_s14 = smov 8  }
  0x25   : > { %s2271_s2 = sld [smem:[#allocation24_spill]]  ;;  %s1563_s21 = scalar_lea.vmem %s1905_s26, 2048 }
  0x26   : > { %p1564_p2 = scmp.ne.s32.totalorder %s1905_s26, %s1563_s21  ;;  %p1571_p9 = scmp.lt.s32.totalorder %s1905_s26, %s1905_s26 }
  0x27   : > { %p1572_p10 = scmp.lt.s32.totalorder %s1563_s21, %s1563_s21 }
  0x28   : > { %p1566_p5 = pnand %p1564_p2, %p1911_p7 }
  0x29   : > { %p1573_p11 = por %p1572_p10, %p1571_p9 }
  0x2a   : > { %p1567_p8 = pneg %p1566_p5 }
  0x2b   : > { %1449 = dma.hbm_to_vmem [thread:$0]  (!%p1901_p6), %s2271_s2, 2048, %s317_s22, [#allocation6], %s1797_s13, %s1797_s13, %s1798_s14  }
  0x2c   : > { %p1574_p12 = pnand %p1573_p11, %p1567_p8 }
  0x2e   : > { %1577 = shalt.err (!%p1574_p12)
}
  0x2f   : > { %s2272_s4 = sld [smem:[#allocation25_spill]]  ;;  %s1589_s22 = scalar_lea.vmem %s1907_s29, 2048 }
  0x30   : > { %p1590_p13 = scmp.ne.s32.totalorder %s1907_s29, %s1589_s22  ;;  %p1597_p5 = scmp.lt.s32.totalorder %s1907_s29, %s1907_s29 }
  0x31   : > { %p1598_p8 = scmp.lt.s32.totalorder %s1589_s22, %s1589_s22 }
  0x32   : > { %p1592_p0 = pnand %p1590_p13, %p1911_p7 }
  0x33   : > { %p1599_p9 = por %p1598_p8, %p1597_p5 }
  0x34   : > { %p1593_p2 = pneg %p1592_p0 }
  0x35   : > { %1452 = dma.hbm_to_vmem [thread:$0]  (!%p1901_p6), %s2272_s4, 2048, %s1905_s26, [#allocation9], %s1797_s13, %s1797_s13, %s1798_s14  }
  0x36   : > { %p1600_p10 = pnand %p1599_p9, %p1593_p2 }
  0x38   : > { %1603 = shalt.err (!%p1600_p10)
}
  0x39   : > { %s2273_s7 = sld [smem:[#allocation27_spill]]  ;;  %s1799_s26 = smov [#allocation10]  }
  0x3a   : > { %s348_s16 = sshll.u32 %s1799_s26, 4  ;;  %s1800_s21 = smov [#allocation13]   ;;  %s349_s16 = int_to_ptr.vmem [resolvable:$true] %s348_s16 }
  0x3b   : > { %s377_s25 = sshll.u32 %s1800_s21, 4  ;;  %s1615_s28 = scalar_lea.vmem %s349_s16, 2048  ;;  %s378_s25 = int_to_ptr.vmem [resolvable:$true] %s377_s25 }
  0x3c   : > { %p1616_p11 = scmp.ne.s32.totalorder %s349_s16, %s1615_s28  ;;  %p1623_p0 = scmp.lt.s32.totalorder %s349_s16, %s349_s16 }
  0x3d   : > { %p1624_p2 = scmp.lt.s32.totalorder %s1615_s28, %s1615_s28 }
  0x3e   : > { %p1618_p12 = pnand %p1616_p11, %p1911_p7 }
  0x3f   : > { %1458 = dma.hbm_to_vmem [thread:$0]  (!%p1901_p6), %s2273_s7, 2048, %s1907_s29, [#allocation12], %s1797_s13, %s1797_s13, %s1798_s14  }
  0x40   : > { %p1619_p13 = pneg %p1618_p12  ;;  %p1625_p5 = por %p1624_p2, %p1623_p0 }
  0x42   : > { %p1626_p8 = pnand %p1625_p5, %p1619_p13 }
  0x44   : > { %1629 = shalt.err (!%p1626_p8)
}
  0x45   : > { %s2274_s6 = sld [smem:[#allocation26_spill]]  ;;  %s1641_s12 = scalar_lea.vmem %s378_s25, 2048 }
  0x46   : > { %p1642_p9 = scmp.ne.s32.totalorder %s378_s25, %s1641_s12  ;;  %p1649_p12 = scmp.lt.s32.totalorder %s378_s25, %s378_s25 }
  0x47   : > { %p1650_p0 = scmp.lt.s32.totalorder %s1641_s12, %s1641_s12 }
  0x48   : > { %p1644_p10 = pnand %p1642_p9, %p1911_p7 }
  0x49   : > { %p1651_p13 = por %p1650_p0, %p1649_p12 }
  0x4a   : > { %p1645_p11 = pneg %p1644_p10 }
  0x4b   : > { %1455 = dma.hbm_to_vmem [thread:$0]  (!%p1901_p6), %s2274_s6, 2048, %s349_s16, [#allocation9], %s1797_s13, %s1797_s13, %s1798_s14  }
  0x4c   : > { %p1652_p2 = pnand %p1651_p13, %p1645_p11 }
  0x4e   : > { %1655 = shalt.err (!%p1652_p2)
}
  0x4f   : > { %s2275_s9 = sld [smem:[#allocation28_spill]]  ;;  %s1131_s27 = sadd.s32 4294967294, %s1792_s20  }
  0x50   : > { %s1977_s30 = sadd.s32 1, %s1792_s20   ;;  %s39_s16 = sadd.s32 1, %s1788_s19 }
  0x51   : > { %2276 = sst [smem:[#allocation22_spill]] %s1977_s30  ;;  %s36_s21 = ssub.s32 %s1792_s20, %s1977_s30 }
  0x52   : > { %p46_p7 = scmp.ne.s32.totalorder %s1788_s19, %s1784_s18  ;;  %p37_p5 = scmp.eq.s32.totalorder %s36_s21, 0 }
  0x53   : > { %p47_p8 = scmp.eq.s32.totalorder %s1792_s20, 0  ;;  %p52_p9 = scmp.ne.s32.totalorder %s1784_s18, %s1780_s17 }
  0x54   : > { %p291_p10 = scmp.eq.s32.totalorder %s1887_s23, 1  ;;  %p297_p0 = scmp.eq.s32.totalorder %s1131_s27, 1 }
  0x55   : > { %1461 = dma.hbm_to_vmem [thread:$0]  (!%p1901_p6), %s2275_s9, 2048, %s378_s25, [#allocation12], %s1797_s13, %s1797_s13, %s1798_s14  }
  0x56   : > { %s1989_s28 = scalar_select %p37_p5, %s1788_s19, %s39_s16  }
  0x57   : > { %p48_p11 = por %p47_p8, %p46_p7  ;;  %p1993_p12 = por %p2258_p1, %p52_p9 }
  0x58   : > { %2277 = sst [smem:[#allocation23_spill]] %s1989_s28  ;;  %p1997_p6 = por %p291_p10, %p46_p7 }
  0x59   : > { %s2278_s29 = scalar_select %p1993_p12, 1, 0 }
  0x5a   : > { %s2279_s13 = scalar_select %p1997_p6, 1, 0 }
  0x5b   : > { %p1478_p13 = scmp.lt.s32.totalorder %s1792_s20, 2  ;;  %s394_s14 = sand.u32 1, %s1788_s19  }
  0x5c   : > { %p2003_p2 = por %p297_p0, %p52_p9  ;;  %s2007_s22 = sshll.u32 %s394_s14, 3 }
  0x5d   : > { %s1140_s12 = sshll.u32 %s1792_s20, 7  ;;  %s398_s21 = scalar_lea.vmem [#allocation2], %s2007_s22 }
  0x5e   : > { %s2280_s25 = scalar_select %p2003_p2, 1, 0 }
  0x5f   : > { %s2013_s16 = scalar_lea.hbm %s2243_s0, %s1140_s12  ;;  %s405_s27 = sshll.u32 %s398_s21, 4  ;;  %s406_s27 = int_to_ptr.vmem [resolvable:$true] %s405_s27 }
  0x60   : > { %p2016_p7 = pnand %p1478_p13, %p48_p11  ;;  %s2023_s7 = scalar_lea.hbm %s2244_s1, %s1140_s12 }
  0x61   : > { %s395_s15 = scalar_lea.sflag [#allocation3], %s394_s14  ;;  %s1656_s26 = scalar_lea.hbm %s2013_s16, 128 }
  0x62   : > { %p1657_p5 = scmp.ne.s32.totalorder %s2013_s16, %s1656_s26  ;;  %p1658_p8 = pneg %p2016_p7 }
  0x63   : > { %s1661_s28 = scalar_lea.hbm %s2243_s0, 256  ;;  %p1662_p11 = scmp.lt.s32.totalorder %s2013_s16, %s2243_s0 }
  0x64   : > { %p1659_p9 = pnand %p1658_p8, %p1657_p5  ;;  %p1663_p0 = scmp.lt.s32.totalorder %s1661_s28, %s1656_s26 }
  0x66   : > { %p1660_p10 = pneg %p1659_p9  ;;  %p1664_p13 = por %p1663_p0, %p1662_p11 }
  0x68   : > { %p1665_p4 = pnand %p1664_p13, %p1660_p10 }
  0x6a   : > { %1668 = shalt.err (!%p1665_p4)
}
  0x6b   : > { %s1669_s4 = scalar_lea.vmem %s406_s27, 128  ;;  %s1801_s6 = smov [#allocation2]  }
  0x6c   : > { %p1670_p1 = scmp.ne.s32.totalorder %s406_s27, %s1669_s4  ;;  %s1674_s14 = sshll.u32 %s1801_s6, 4  ;;  %s1675_s14 = int_to_ptr.vmem [resolvable:$false] %s1674_s14 }
  0x6d   : > { %s1676_s9 = scalar_lea.vmem %s1675_s14, 256  ;;  %p1677_p9 = scmp.lt.s32.totalorder %s406_s27, %s1675_s14 }
  0x6e   : > { %p1672_p2 = pnand %p1670_p1, %p1658_p8  ;;  %p1678_p6 = scmp.lt.s32.totalorder %s1676_s9, %s1669_s4 }
  0x70   : > { %p1673_p5 = pneg %p1672_p2  ;;  %p1679_p12 = por %p1678_p6, %p1677_p9 }
  0x72   : > { %p1680_p3 = pnand %p1679_p12, %p1673_p5 }
  0x74   : > { %1683 = shalt.err (!%p1680_p3)
}
  0x75   : > { %1465 = dma.hbm_to_vmem [thread:$0]  (!%p2016_p7), %s2013_s16, 128, %s406_s27, %s395_s15  }
  0x76   : > { %s412_s19 = sand.u32 1, %s1792_s20   ;;  %s416_s30 = scalar_lea.vmem [#allocation5], %s2007_s22 }
  0x77   : > { %s423_s28 = sshll.u32 %s416_s30, 4  ;;  %s413_s12 = scalar_lea.sflag [#allocation6], %s412_s19  ;;  %s424_s28 = int_to_ptr.vmem [resolvable:$true] %s423_s28 }
  0x78   : > { %s1684_s26 = scalar_lea.hbm %s2023_s7, 128  ;;  %s1689_s6 = scalar_lea.hbm %s2244_s1, 256 }
  0x79   : > { %p1685_p1 = scmp.ne.s32.totalorder %s2023_s7, %s1684_s26  ;;  %p1690_p12 = scmp.lt.s32.totalorder %s2023_s7, %s2244_s1 }
  0x7a   : > { %p1691_p6 = scmp.lt.s32.totalorder %s1689_s6, %s1684_s26 }
  0x7b   : > { %p1687_p3 = pnand %p1685_p1, %p1658_p8 }
  0x7c   : > { %p1692_p2 = por %p1691_p6, %p1690_p12 }
  0x7d   : > { %p1688_p4 = pneg %p1687_p3 }
  0x7f   : > { %p1693_p10 = pnand %p1692_p2, %p1688_p4 }
  0x81   : > { %1696 = shalt.err (!%p1693_p10)
}
  0x82   : > { %s1697_s22 = scalar_lea.vmem %s424_s28, 128  ;;  %s1802_s16 = smov [#allocation5]  }
  0x83   : > { %p1698_p11 = scmp.ne.s32.totalorder %s424_s28, %s1697_s22  ;;  %s1702_s27 = sshll.u32 %s1802_s16, 4  ;;  %s1703_s27 = int_to_ptr.vmem [resolvable:$false] %s1702_s27 }
  0x84   : > { %s1704_s15 = scalar_lea.vmem %s1703_s27, 256  ;;  %p1705_p5 = scmp.lt.s32.totalorder %s424_s28, %s1703_s27 }
  0x85   : > { %p1700_p0 = pnand %p1698_p11, %p1658_p8  ;;  %p1706_p9 = scmp.lt.s32.totalorder %s1704_s15, %s1697_s22 }
  0x87   : > { %p1701_p13 = pneg %p1700_p0  ;;  %p1707_p1 = por %p1706_p9, %p1705_p5 }
  0x89   : > { %p1708_p3 = pnand %p1707_p1, %p1701_p13 }
  0x8b   : > { %1711 = shalt.err (!%p1708_p3)
}
  0x8c   : > { %1468 = dma.hbm_to_vmem [thread:$0]  (!%p2016_p7), %s2023_s7, 128, %s424_s28, %s413_s12  }
  0x8d   : > { %p2282_p4 = scmp.ne.s32.totalorder %s2268_s24, 0 }
  0x8e   : > { %s2068_s19 = sand.u32 (!%p2282_p4), 1, %s1784_s18   ;;  %p2283_p8 = scmp.ne.s32.totalorder (!%p2282_p4), %s2278_s29, 0 }
  0x8f   : > { %432 = sbr.rel (%p2282_p4) target bundleno = 802 (0x322), region = 64  ;;  %s2071_s30 = sshll.u32 (!%p2282_p4), %s2068_s19, 3 }
  0x90   : > { %s435_s26 = scalar_lea.sflag (!%p2282_p4), [#allocation3], %s2068_s19  ;;  %s438_s21 = scalar_lea.vmem (!%p2282_p4), [#allocation2], %s2071_s30 }
  0x94   : > { %1755 = dma.done.wait (%p2283_p8), %s435_s26, 128  }
  0x95   : > { %1757 = vsyncadd (%p2283_p8), %s435_s26, 4294967168  ;;  %s443_s2 = sand.u32 1, %s1887_s23   ;;  %s447_s24 = scalar_lea.vmem [#allocation5], %s2071_s30 }
  0x96   : > { %s444_s7 = scalar_lea.sflag [#allocation6], %s443_s2 }
  0x97   : > { %1759 = dma.done.wait (%p2283_p8), %s444_s7, 128  }
  0x98   : > { %1761 = vsyncadd (%p2283_p8), %s444_s7, 4294967168  ;;  %p2284_p7 = scmp.eq.s32.totalorder %s1887_s23, 0 }
  0x9a   : > { %1763 = dma.done.wait (%p2284_p7), [#allocation6], 2048   ;;  %p2285_p12 = pmov %p2284_p7 }
  0x9b   : > { %p2286_p6 = pmov %p2284_p7 }
  0x9c   : > { %1765 = vsyncadd (%p2285_p12), [#allocation6], 4294965248 }
  0x9d   : > { %1767 = dma.done.wait (%p2286_p6), [#allocation9], 4096   ;;  %p2287_p2 = pmov %p2286_p6 }
  0x9f   : > { %1769 = vsyncadd (%p2287_p2), [#allocation9], 4294963200  ;;  %p2288_p10 = pmov %p2287_p2 }
  0xa0   : > { %p2289_p11 = pmov %p2287_p2 }
  0xa1   : > { %1771 = dma.done.wait (%p2288_p10), [#allocation12], 4096  }
  0xa2   : > { %1773 = vsyncadd (%p2289_p11), [#allocation12], 4294963200  ;;  %v1803_v0 = vmov 0.0   ;;  %vm1804_vm0 = vmmov 0   ;;  %v528_v1 = vld [vmem:[#allocation7 + $0x78] sm:$0xff]  ;;  %v527_v3 = vld [vmem:[#allocation7 + $0x70] sm:$0xff] }
  0xa3   : > { %1245 = vmatprep.subr.mxu0 %v1803_v0  ;;  %1280 = vmatprep.subr.mxu1 %v1803_v0  ;;  %v622_v2 = vld [vmem:[#allocation8 + $0x78] sm:$0xff]  ;;  %v621_v4 = vld [vmem:[#allocation8 + $0x70] sm:$0xff]  ;;  %v526_v5 = vld [vmem:[#allocation7 + $0x68] sm:$0xff]  ;;  %s1157_s16 = sshll.u32 %s1887_s23, 7  ;;  %s510_s27 = scalar_lea.vmem [#allocation14], %s2071_s30 }
  0xa4   : > { %1277 = vmatprep.mubr.msk.f32.mxu0 %vm1804_vm0, %v1803_v0  ;;  %1312 = vmatprep.mubr.msk.f32.mxu1 %vm1804_vm0, %v1803_v0  ;;  %v620_v6 = vld [vmem:[#allocation8 + $0x68] sm:$0xff]  ;;  %v525_v7 = vld [vmem:[#allocation7 + $0x60] sm:$0xff]  ;;  %v524_v9 = vld [vmem:[#allocation7 + $0x58] sm:$0xff]  ;;  %s991_s15 = sshll.u32 %s510_s27, 4  ;;  %s989_s2 = scalar_lea.hbm %s2254_s11, %s1157_s16  ;;  %s992_s15 = int_to_ptr.vmem [resolvable:$true] %s991_s15 }
  0xa5   : > { %1246 = vmatpush3.msra.mxu0 %v528_v1  ;;  %1281 = vmatpush3.msra.mxu1 %v622_v2  ;;  %v619_v8 = vld [vmem:[#allocation8 + $0x60] sm:$0xff]  ;;  %v618_v10 = vld [vmem:[#allocation8 + $0x58] sm:$0xff]  ;;  %v523_v11 = vld [vmem:[#allocation7 + $0x50] sm:$0xff]  ;;  %s978_s7 = scalar_lea.sflag [#allocation4], %s2068_s19  ;;  %p2290_p13 = scmp.ne.s32.totalorder %s2279_s13, 0 }
  0xa6   : > { %1247 = vmatprep.subr.mxu0 %v1803_v0  ;;  %1282 = vmatprep.subr.mxu1 %v1803_v0  ;;  %v617_v12 = vld [vmem:[#allocation8 + $0x50] sm:$0xff]  ;;  %v522_v13 = vld [vmem:[#allocation7 + $0x48] sm:$0xff]  ;;  %v521_v15 = vld [vmem:[#allocation7 + $0x40] sm:$0xff]  ;;  %s1805_s29 = smov [#allocation14]  }
  0xa7   : > { %1248 = vmatpush3.msra.mxu0 %v527_v3  ;;  %1283 = vmatpush3.msra.mxu1 %v621_v4  ;;  %v616_v14 = vld [vmem:[#allocation8 + $0x48] sm:$0xff]  ;;  %v615_v16 = vld [vmem:[#allocation8 + $0x40] sm:$0xff]  ;;  %v520_v17 = vld [vmem:[#allocation7 + $0x38] sm:$0xff]  ;;  %s1716_s23 = sshll.u32 %s1805_s29, 4  ;;  %s1717_s23 = int_to_ptr.vmem [resolvable:$false] %s1716_s23 }
  0xa8   : > { %1249 = vmatprep.subr.mxu0 %v1803_v0  ;;  %1284 = vmatprep.subr.mxu1 %v1803_v0  ;;  %v614_v18 = vld [vmem:[#allocation8 + $0x38] sm:$0xff]  ;;  %v519_v19 = vld [vmem:[#allocation7 + $0x30] sm:$0xff]  ;;  %v518_v21 = vld [vmem:[#allocation7 + $0x28] sm:$0xff]  ;;  %s1718_s30 = scalar_lea.vmem %s1717_s23, 256  ;;  %p1719_p1 = scmp.lt.s32.totalorder %s992_s15, %s1717_s23 }
  0xa9   : > { %1250 = vmatpush3.msra.mxu0 %v526_v5  ;;  %1285 = vmatpush3.msra.mxu1 %v620_v6  ;;  %v613_v20 = vld [vmem:[#allocation8 + $0x30] sm:$0xff]  ;;  %v612_v22 = vld [vmem:[#allocation8 + $0x28] sm:$0xff]  ;;  %v517_v23 = vld [vmem:[#allocation7 + $0x20] sm:$0xff] }
  0xaa   : > { %1251 = vmatprep.subr.mxu0 %v1803_v0  ;;  %1286 = vmatprep.subr.mxu1 %v1803_v0  ;;  %v611_v24 = vld [vmem:[#allocation8 + $0x20] sm:$0xff]  ;;  %v516_v25 = vld [vmem:[#allocation7 + $0x18] sm:$0xff]  ;;  %v515_v27 = vld [vmem:[#allocation7 + $0x10] sm:$0xff] }
  0xab   : > { %1252 = vmatpush3.msra.mxu0 %v525_v7  ;;  %1287 = vmatpush3.msra.mxu1 %v619_v8  ;;  %v610_v26 = vld [vmem:[#allocation8 + $0x18] sm:$0xff]  ;;  %v609_v28 = vld [vmem:[#allocation8 + $0x10] sm:$0xff]  ;;  %v514_v29 = vld [vmem:[#allocation7 + $0x8] sm:$0xff] }
  0xac   : > { %1253 = vmatprep.subr.mxu0 %v1803_v0  ;;  %1288 = vmatprep.subr.mxu1 %v1803_v0  ;;  %v608_v30 = vld [vmem:[#allocation8 + $0x8] sm:$0xff]  ;;  %v513_v31 = vld [vmem:[#allocation7] sm:$0xff]  ;;  %v512_v34 = vld [vmem:[%s447_s24] sm:$0xff]  ;;  %s1712_s24 = scalar_lea.vmem %s992_s15, 128 }
  0xad   : > { %1254 = vmatpush3.msra.mxu0 %v524_v9  ;;  %1289 = vmatpush3.msra.mxu1 %v618_v10  ;;  %v607_v32 = vld [vmem:[#allocation8] sm:$0xff]  ;;  %v732_v35 = vld [vmem:[#allocation11 + $0x78] sm:$0xff]  ;;  %v731_v37 = vld [vmem:[#allocation11 + $0x70] sm:$0xff]  ;;  %p1713_p0 = scmp.ne.s32.totalorder %s992_s15, %s1712_s24  ;;  %p1720_p3 = scmp.lt.s32.totalorder %s1718_s30, %s1712_s24 }
  0xae   : > { %1255 = vmatprep.subr.mxu0 %v1803_v0  ;;  %1290 = vmatprep.subr.mxu1 %v1803_v0  ;;  %v2133_v33 = vld [vmem:[%s438_s21] sm:$0xff]  ;;  %v716_v36 = vld [vmem:[#allocation10 + $0x78] sm:$0xff]  ;;  %v715_v38 = vld [vmem:[#allocation10 + $0x70] sm:$0xff] }
  0xaf   : > { %1256 = vmatpush3.msra.mxu0 %v523_v11  ;;  %1291 = vmatpush3.msra.mxu1 %v617_v12  ;;  %v730_v39 = vld [vmem:[#allocation11 + $0x68] sm:$0xff]  ;;  %v729_v41 = vld [vmem:[#allocation11 + $0x60] sm:$0xff]  ;;  %v728_v43 = vld [vmem:[#allocation11 + $0x58] sm:$0xff]  ;;  %p1714_p5 = pnand %p1713_p0, %p2290_p13  ;;  %p1721_p4 = por %p1720_p3, %p1719_p1 }
  0xb0   : > { %1257 = vmatprep.subr.mxu0 %v1803_v0  ;;  %1292 = vmatprep.subr.mxu1 %v1803_v0  ;;  %v714_v40 = vld [vmem:[#allocation10 + $0x68] sm:$0xff]  ;;  %v713_v42 = vld [vmem:[#allocation10 + $0x60] sm:$0xff]  ;;  %v712_v44 = vld [vmem:[#allocation10 + $0x58] sm:$0xff] }
  0xb1   : > { %1258 = vmatpush3.msra.mxu0 %v522_v13  ;;  %1293 = vmatpush3.msra.mxu1 %v616_v14  ;;  %v727_v45 = vld [vmem:[#allocation11 + $0x50] sm:$0xff]  ;;  %v726_v47 = vld [vmem:[#allocation11 + $0x48] sm:$0xff]  ;;  %v725_v49 = vld [vmem:[#allocation11 + $0x40] sm:$0xff]  ;;  %p1715_p9 = pneg %p1714_p5 }
  0xb2   : > { %1259 = vmatprep.subr.mxu0 %v1803_v0  ;;  %1294 = vmatprep.subr.mxu1 %v1803_v0  ;;  %v711_v46 = vld [vmem:[#allocation10 + $0x50] sm:$0xff]  ;;  %v710_v48 = vld [vmem:[#allocation10 + $0x48] sm:$0xff]  ;;  %v709_v50 = vld [vmem:[#allocation10 + $0x40] sm:$0xff] }
  0xb3   : > { %1260 = vmatpush3.msra.mxu0 %v521_v15  ;;  %1295 = vmatpush3.msra.mxu1 %v615_v16  ;;  %v724_v51 = vld [vmem:[#allocation11 + $0x38] sm:$0xff]  ;;  %v723_v53 = vld [vmem:[#allocation11 + $0x30] sm:$0xff]  ;;  %v722_v55 = vld [vmem:[#allocation11 + $0x28] sm:$0xff]  ;;  %p1722_p8 = pnand %p1721_p4, %p1715_p9 }
  0xb4   : > { %1261 = vmatprep.subr.mxu0 %v1803_v0  ;;  %1296 = vmatprep.subr.mxu1 %v1803_v0  ;;  %v708_v52 = vld [vmem:[#allocation10 + $0x38] sm:$0xff]  ;;  %v707_v54 = vld [vmem:[#allocation10 + $0x30] sm:$0xff]  ;;  %v706_v56 = vld [vmem:[#allocation10 + $0x28] sm:$0xff] }
  0xb5   : > { %1262 = vmatpush3.msra.mxu0 %v520_v17  ;;  %1297 = vmatpush3.msra.mxu1 %v614_v18  ;;  %v721_v57 = vld [vmem:[#allocation11 + $0x20] sm:$0xff]  ;;  %v720_v59 = vld [vmem:[#allocation11 + $0x18] sm:$0xff]  ;;  %v719_v61 = vld [vmem:[#allocation11 + $0x10] sm:$0xff] }
  0xb6   : > { %1263 = vmatprep.subr.mxu0 %v1803_v0  ;;  %1298 = vmatprep.subr.mxu1 %v1803_v0  ;;  %v705_v58 = vld [vmem:[#allocation10 + $0x20] sm:$0xff]  ;;  %v704_v60 = vld [vmem:[#allocation10 + $0x18] sm:$0xff]  ;;  %v703_v62 = vld [vmem:[#allocation10 + $0x10] sm:$0xff] }
  0xb7   : > { %1264 = vmatpush3.msra.mxu0 %v519_v19  ;;  %1299 = vmatpush3.msra.mxu1 %v613_v20  ;;  %v718_v63 = vld [vmem:[#allocation11 + $0x8] sm:$0xff]  ;;  %v717_v2 = vld [vmem:[#allocation11] sm:$0xff]  ;;  %v897_v14 = vld [vmem:[#allocation13 + $0x78] sm:$0xff] }
  0xb8   : > { %1265 = vmatprep.subr.mxu0 %v1803_v0  ;;  %1300 = vmatprep.subr.mxu1 %v1803_v0  ;;  %v702_v1 = vld [vmem:[#allocation10 + $0x8] sm:$0xff]  ;;  %v701_v3 = vld [vmem:[#allocation10] sm:$0xff]  ;;  %v896_v15 = vld [vmem:[#allocation13 + $0x70] sm:$0xff] }
  0xb9   : > { %1266 = vmatpush3.msra.mxu0 %v518_v21  ;;  %1301 = vmatpush3.msra.mxu1 %v612_v22  ;;  %v1152_v4 = vld [vmem:[%s2246_s3] ss:$0 sm:$0xff]  ;;  %v895_v16 = vld [vmem:[#allocation13 + $0x68] sm:$0xff]  ;;  %v893_v18 = vld [vmem:[#allocation13 + $0x58] sm:$0xff] }
  0xba   : > { %1267 = vmatprep.subr.mxu0 %v1803_v0  ;;  %1302 = vmatprep.subr.mxu1 %v1803_v0  ;;  %v1153_v5 = vld [vmem:[%s2248_s5] ss:$0 sm:$0xff]  ;;  %v892_v19 = vld [vmem:[#allocation13 + $0x50] sm:$0xff]  ;;  %v891_v20 = vld [vmem:[#allocation13 + $0x48] sm:$0xff] }
  0xbb   : > { %1268 = vmatpush3.msra.mxu0 %v517_v23  ;;  %1303 = vmatpush3.msra.mxu1 %v611_v24  ;;  %v894_v17 = vld [vmem:[#allocation13 + $0x60] sm:$0xff]  ;;  %v889_v22 = vld [vmem:[#allocation13 + $0x38] sm:$0xff]  ;;  %v888_v23 = vld [vmem:[#allocation13 + $0x30] sm:$0xff] }
  0xbc   : > { %1269 = vmatprep.subr.mxu0 %v1803_v0  ;;  %1304 = vmatprep.subr.mxu1 %v1803_v0  ;;  %v890_v21 = vld [vmem:[#allocation13 + $0x40] sm:$0xff]  ;;  %v887_v24 = vld [vmem:[#allocation13 + $0x28] sm:$0xff] }
  0xbd   : > { %1270 = vmatpush3.msra.mxu0 %v516_v25  ;;  %1305 = vmatpush3.msra.mxu1 %v610_v26  ;;  %v886_v25 = vld [vmem:[#allocation13 + $0x20] sm:$0xff]  ;;  %v885_v26 = vld [vmem:[#allocation13 + $0x18] sm:$0xff] }
  0xbe   : > { %1271 = vmatprep.subr.mxu0 %v1803_v0  ;;  %1306 = vmatprep.subr.mxu1 %v1803_v0 }
  0xbf   : > { %1272 = vmatpush3.msra.mxu0 %v515_v27  ;;  %1307 = vmatpush3.msra.mxu1 %v609_v28  ;;  %v884_v27 = vld [vmem:[#allocation13 + $0x10] sm:$0xff]  ;;  %v883_v28 = vld [vmem:[#allocation13 + $0x8] sm:$0xff] }
  0xc0   : > { %1273 = vmatprep.subr.mxu0 %v1803_v0  ;;  %1308 = vmatprep.subr.mxu1 %v1803_v0 }
  0xc1   : > { %1274 = vmatpush3.msra.mxu0 %v514_v29  ;;  %1309 = vmatpush3.msra.mxu1 %v608_v30  ;;  %v882_v29 = vld [vmem:[#allocation13] sm:$0xff] }
  0xc2   : > { %1275 = vmatprep.subr.mxu0 %v1803_v0  ;;  %1310 = vmatprep.subr.mxu1 %v1803_v0 }
  0xc3   : > { %1276 = vmatpush3.msra.mxu0 %v513_v31  ;;  %1311 = vmatpush3.msra.mxu1 %v607_v32  ;;  %v1154_v32 = vld [vmem:[%s2251_s8] ss:$0 sm:$0xff] }
  0xc4   : > { %1278 = vmatmul.mubr.f32.vlgmr.msra.gmra.mxu0 %v2133_v33  ;;  %1313 = vmatmul.mubr.f32.vlgmr.msra.gmra.mxu1 %v512_v34 }
  0xc5   : > { %1315 = vmatprep.subr.mxu0 %v1803_v0  ;;  %1350 = vmatprep.subr.mxu1 %v1803_v0 }
  0xc6   : > { %1316 = vmatpush3.msra.mxu0 %v732_v35  ;;  %1351 = vmatpush3.msra.mxu1 %v716_v36 }
  0xc7   : > { %1317 = vmatprep.subr.mxu0 %v1803_v0  ;;  %1352 = vmatprep.subr.mxu1 %v1803_v0 }
  0xc8   : > { %1318 = vmatpush3.msra.mxu0 %v731_v37  ;;  %1353 = vmatpush3.msra.mxu1 %v715_v38 }
  0xc9   : > { %1319 = vmatprep.subr.mxu0 %v1803_v0  ;;  %1354 = vmatprep.subr.mxu1 %v1803_v0 }
  0xca   : > { %1320 = vmatpush3.msra.mxu0 %v730_v39  ;;  %1355 = vmatpush3.msra.mxu1 %v714_v40 }
  0xcb   : > { %1321 = vmatprep.subr.mxu0 %v1803_v0  ;;  %1356 = vmatprep.subr.mxu1 %v1803_v0 }
  0xcc   : > { %1322 = vmatpush3.msra.mxu0 %v729_v41  ;;  %1357 = vmatpush3.msra.mxu1 %v713_v42 }
  0xcd   : > { %1323 = vmatprep.subr.mxu0 %v1803_v0  ;;  %1358 = vmatprep.subr.mxu1 %v1803_v0 }
  0xce   : > { %1324 = vmatpush3.msra.mxu0 %v728_v43  ;;  %1359 = vmatpush3.msra.mxu1 %v712_v44 }
  0xcf   : > { %1325 = vmatprep.subr.mxu0 %v1803_v0  ;;  %1360 = vmatprep.subr.mxu1 %v1803_v0 }
  0xd0   : > { %1326 = vmatpush3.msra.mxu0 %v727_v45  ;;  %1361 = vmatpush3.msra.mxu1 %v711_v46 }
  0xd1   : > { %1327 = vmatprep.subr.mxu0 %v1803_v0  ;;  %1362 = vmatprep.subr.mxu1 %v1803_v0 }
  0xd2   : > { %1328 = vmatpush3.msra.mxu0 %v726_v47  ;;  %1363 = vmatpush3.msra.mxu1 %v710_v48 }
  0xd3   : > { %1329 = vmatprep.subr.mxu0 %v1803_v0  ;;  %1364 = vmatprep.subr.mxu1 %v1803_v0 }
  0xd4   : > { %1330 = vmatpush3.msra.mxu0 %v725_v49  ;;  %1365 = vmatpush3.msra.mxu1 %v709_v50 }
  0xd5   : > { %1331 = vmatprep.subr.mxu0 %v1803_v0  ;;  %1366 = vmatprep.subr.mxu1 %v1803_v0 }
  0xd6   : > { %1332 = vmatpush3.msra.mxu0 %v724_v51  ;;  %1367 = vmatpush3.msra.mxu1 %v708_v52 }
  0xd7   : > { %1333 = vmatprep.subr.mxu0 %v1803_v0  ;;  %1368 = vmatprep.subr.mxu1 %v1803_v0 }
  0xd8   : > { %1334 = vmatpush3.msra.mxu0 %v723_v53  ;;  %1369 = vmatpush3.msra.mxu1 %v707_v54 }
  0xd9   : > { %1335 = vmatprep.subr.mxu0 %v1803_v0  ;;  %1370 = vmatprep.subr.mxu1 %v1803_v0 }
  0xda   : > { %1336 = vmatpush3.msra.mxu0 %v722_v55  ;;  %1371 = vmatpush3.msra.mxu1 %v706_v56 }
  0xdb   : > { %1337 = vmatprep.subr.mxu0 %v1803_v0  ;;  %1372 = vmatprep.subr.mxu1 %v1803_v0 }
  0xdc   : > { %1338 = vmatpush3.msra.mxu0 %v721_v57  ;;  %1373 = vmatpush3.msra.mxu1 %v705_v58 }
  0xdd   : > { %1339 = vmatprep.subr.mxu0 %v1803_v0  ;;  %1374 = vmatprep.subr.mxu1 %v1803_v0 }
  0xde   : > { %1340 = vmatpush3.msra.mxu0 %v720_v59  ;;  %1375 = vmatpush3.msra.mxu1 %v704_v60 }
  0xdf   : > { %1341 = vmatprep.subr.mxu0 %v1803_v0  ;;  %1376 = vmatprep.subr.mxu1 %v1803_v0 }
  0xe0   : > { %1347 = vmatprep.mubr.msk.f32.mxu0 %vm1804_vm0, %v1803_v0  ;;  %1382 = vmatprep.mubr.msk.f32.mxu1 %vm1804_vm0, %v1803_v0 }
  0xe1   : > { %1342 = vmatpush3.msra.mxu0 %v719_v61  ;;  %1377 = vmatpush3.msra.mxu1 %v703_v62 }
  0xe2   : > { %1343 = vmatprep.subr.mxu0 %v1803_v0  ;;  %1378 = vmatprep.subr.mxu1 %v1803_v0 }
  0xe3   : > { %1344 = vmatpush3.msra.mxu0 %v718_v63  ;;  %1379 = vmatpush3.msra.mxu1 %v702_v1 }
  0xe4   : > { %1345 = vmatprep.subr.mxu0 %v1803_v0  ;;  %1380 = vmatprep.subr.mxu1 %v1803_v0 }
  0xe5   : > { %1346 = vmatpush3.msra.mxu0 %v717_v2  ;;  %1381 = vmatpush3.msra.mxu1 %v701_v3 }
  0xe6   : > { %1385 = vmatprep.subr.mxu0 %v1803_v0 }
 0x184   : > { %v602_v6 = vpop.f32.mrf.mxu0  ;;  %v696_v7 = vpop.f32.mrf.mxu1 }
 0x185   : > { %v603_v8 = vadd.f32 %v1152_v4, %v602_v6  ;;  %v697_v9 = vadd.f32 %v1153_v5, %v696_v7 }
 0x186   : > { %v1279_v10 = vpop.f32.mrf.mxu0  ;;  %v1314_v11 = vpop.f32.mrf.mxu1 }
 0x187   : > { %v606_v12 = vmax.f32 %v603_v8, 0.0  ;;  %v700_v13 = vmax.f32 %v697_v9, 0.0 }
 0x189   : > { %1348 = vmatmul.mubr.f32.vlgmr.msra.gmra.mxu0 %v700_v13  ;;  %1383 = vmatmul.mubr.f32.vlgmr.msra.gmra.mxu1 %v606_v12 }
 0x18a   : > { %1386 = vmatpush3.msra.mxu0 %v897_v14  ;;  %1417 = vmatprep.mubr.msk.f32.mxu0 %vm1804_vm0, %v1803_v0 }
 0x18b   : > { %1387 = vmatprep.subr.mxu0 %v1803_v0 }
 0x18c   : > { %1388 = vmatpush3.msra.mxu0 %v896_v15 }
 0x18d   : > { %1389 = vmatprep.subr.mxu0 %v1803_v0 }
 0x18e   : > { %1390 = vmatpush3.msra.mxu0 %v895_v16 }
 0x18f   : > { %1391 = vmatprep.subr.mxu0 %v1803_v0 }
 0x190   : > { %1392 = vmatpush3.msra.mxu0 %v894_v17 }
 0x191   : > { %1393 = vmatprep.subr.mxu0 %v1803_v0 }
 0x192   : > { %1394 = vmatpush3.msra.mxu0 %v893_v18 }
 0x193   : > { %1395 = vmatprep.subr.mxu0 %v1803_v0 }
 0x194   : > { %1396 = vmatpush3.msra.mxu0 %v892_v19 }
 0x195   : > { %1397 = vmatprep.subr.mxu0 %v1803_v0 }
 0x196   : > { %1398 = vmatpush3.msra.mxu0 %v891_v20 }
 0x197   : > { %1399 = vmatprep.subr.mxu0 %v1803_v0 }
 0x198   : > { %1400 = vmatpush3.msra.mxu0 %v890_v21 }
 0x199   : > { %1401 = vmatprep.subr.mxu0 %v1803_v0 }
 0x19a   : > { %1402 = vmatpush3.msra.mxu0 %v889_v22 }
 0x19b   : > { %1403 = vmatprep.subr.mxu0 %v1803_v0 }
 0x19c   : > { %1404 = vmatpush3.msra.mxu0 %v888_v23 }
 0x19d   : > { %1405 = vmatprep.subr.mxu0 %v1803_v0 }
 0x19e   : > { %1406 = vmatpush3.msra.mxu0 %v887_v24 }
 0x19f   : > { %1407 = vmatprep.subr.mxu0 %v1803_v0 }
 0x1a0   : > { %1408 = vmatpush3.msra.mxu0 %v886_v25 }
 0x1a1   : > { %1409 = vmatprep.subr.mxu0 %v1803_v0 }
 0x1a2   : > { %1410 = vmatpush3.msra.mxu0 %v885_v26 }
 0x1a3   : > { %1411 = vmatprep.subr.mxu0 %v1803_v0 }
 0x1a4   : > { %1412 = vmatpush3.msra.mxu0 %v884_v27 }
 0x1a5   : > { %1413 = vmatprep.subr.mxu0 %v1803_v0 }
 0x1a6   : > { %1414 = vmatpush3.msra.mxu0 %v883_v28 }
 0x1a7   : > { %1415 = vmatprep.subr.mxu0 %v1803_v0  ;;  %v1155_v0 = vld [vmem:[%s2253_s10] ss:$0 sm:$0xff] }
 0x1a8   : > { %1416 = vmatpush3.msra.mxu0 %v882_v29 }
 0x249   : > { %v799_v30 = vpop.f32.mrf.mxu0  ;;  %v869_v31 = vpop.f32.mrf.mxu1 }
 0x24a   : > { %v870_v34 = vadd.f32 %v869_v31, %v799_v30 }
 0x24b   : > { %v1349_v35 = vpop.f32.mrf.mxu0  ;;  %v1384_v36 = vpop.f32.mrf.mxu1 }
 0x24c   : > { %v880_v37 = vadd.f32 %v1154_v32, %v870_v34 }
 0x24e   : > { %v881_v38 = vmax.f32 %v880_v37, 0.0 }
 0x250   : > { %1418 = vmatmul.mubr.f32.vlgmr.msra.gmra.mxu0 %v881_v38 }
 0x310   : > { %v971_v39 = vpop.f32.mrf.mxu0 }
 0x311   : > { %v972_v40 = vadd.f32 %v1155_v0, %v971_v39 }
 0x312   : > { %v1419_v41 = vpop.f32.mrf.mxu0 }
 0x313   : > { %v975_v42 = vadd.f32 %v972_v40, %v2133_v33 }
 0x315   : > { %976 = vst [vmem:[%s510_s27] sm:$0xff] %v975_v42 }
 0x316   : > { %1725 = shalt.err (!%p1722_p8)
}
 0x317   : > { %s1726_s28 = scalar_lea.hbm %s989_s2, 128  ;;  %s1730_s4 = scalar_lea.hbm %s2254_s11, 256 }
 0x318   : > { %p1727_p7 = scmp.ne.s32.totalorder %s989_s2, %s1726_s28  ;;  %p1731_p2 = scmp.lt.s32.totalorder %s989_s2, %s2254_s11 }
 0x319   : > { %p1732_p10 = scmp.lt.s32.totalorder %s1730_s4, %s1726_s28 }
 0x31a   : > { %p1728_p12 = pnand %p1727_p7, %p2290_p13 }
 0x31b   : > { %p1733_p11 = por %p1732_p10, %p1731_p2 }
 0x31c   : > { %p1729_p6 = pneg %p1728_p12 }
 0x31e   : > { %p1734_p0 = pnand %p1733_p11, %p1729_p6 }
 0x320   : > { %1737 = shalt.err (!%p1734_p0)
}
 0x321   : > { %1444 = dma.vmem_to_hbm [thread:$0]  (%p2290_p13), %s992_s15, 128, %s989_s2, %s978_s7  }
 0x322 PF: > { %s1003_s9 = sand.u32 1, %s1780_s17   ;;  %p2291_p5 = scmp.ne.s32.totalorder %s2280_s25, 0 }
 0x323   : > { %p2292_p9 = scmp.ge.s32.totalorder %s1792_s20, 2  ;;  %s1004_s22 = scalar_lea.sflag [#allocation4], %s1003_s9 }
 0x325   : > { %p1470_p1 = pnand %p2292_p9, %p2291_p5 }
 0x327   : > { %p1471_p3 = pneg %p1470_p1 }
 0x329   : > { %1775 = dma.done.wait (%p1471_p3), %s1004_s22, 128  }
 0x32a   : > { %1777 = vsyncadd (%p1471_p3), %s1004_s22, 4294967168  ;;  %s2293_s20 = sld [smem:[#allocation22_spill]]  ;;  %s2296_s17 = smov %s1784_s18 }
 0x32b   : > { %s2294_s16 = sld [smem:[#allocation21_spill]] }
 0x32c   : > { %s2295_s19 = sld [smem:[#allocation23_spill]] }
 0x330   : > { %p29_p4 = scmp.ge.s32.totalorder %s2293_s20, 4  }
 0x331   : > { %s2297_s18 = smov %s2294_s16 }
 0x332   :  { %31 = sbr.rel (!%p29_p4) target bundleno = 15 (0xf), region = 142 }
 0x337   :  { %1009 = vsyncpa [#allocation3], 1 }
 0x338   :  { %1011 = vsyncpa [#allocation3 + $0x1], 1 }
 0x339   :  { %1012 = vsyncpa [#allocation6], 1 }
 0x33a   :  { %1014 = vsyncpa [#allocation6 + $0x1], 1 }
 0x33b   :  { %1015 = vsyncpa [#allocation9], 1 }
 0x33c   :  { %1016 = vsyncpa [#allocation12], 1 }
 0x33d   :  { %1017 = vsyncpa [#allocation4], 1 }
 0x33e   :  { %1019 = vsyncpa [#allocation4 + $0x1], 1 }

// kernel: tpu_custom_call.1
= control target key start
LH: loop header
LB: loop body
LE: loop exit
PB: predicated region body
PF: predicated region fallthrough
CT: control target
= control target key end

     0   :  { %s2243_s0 = inlined_call_operand.hbm [shape: f32[16,128], index: 0, kind: input, shape index: {}]   ;;  %s2244_s1 = inlined_call_operand.hbm [shape: f32[16,128], index: 1, kind: input, shape index: {}]   ;;  %s2245_s2 = inlined_call_operand.hbm [shape: f32[128,128], index: 2, kind: input, shape index: {}]   ;;  %s2246_s3 = inlined_call_operand.vmem [shape: f32[1,128], index: 3, kind: input, shape index: {}]   ;;  %s2247_s4 = inlined_call_operand.hbm [shape: f32[128,128], index: 4, kind: input, shape index: {}]   ;;  %s2248_s5 = inlined_call_operand.vmem [shape: f32[1,128], index: 5, kind: input, shape index: {}]   ;;  %s2249_s6 = inlined_call_operand.hbm [shape: f32[128,128], index: 6, kind: input, shape index: {}]   ;;  %s2250_s7 = inlined_call_operand.hbm [shape: f32[128,128], index: 7, kind: input, shape index: {}]   ;;  %s2251_s8 = inlined_call_operand.vmem [shape: f32[1,128], index: 8, kind: input, shape index: {}]   ;;  %s2252_s9 = inlined_call_operand.hbm [shape: f32[128,128], index: 9, kind: input, shape index: {}]   ;;  %s2253_s10 = inlined_call_operand.vmem [shape: f32[1,128], index: 10, kind: input, shape index: {}]   ;;  %s2254_s11 = inlined_call_operand.hbm [shape: f32[16,128], index: 11, kind: output, shape index: {}]  }
   0x1   :  { %2262 = sst [smem:[#allocation24_spill]] %s2245_s2 }
   0x2   :  { %2263 = sst [smem:[#allocation25_spill]] %s2247_s4 }
   0x3   :  { %2264 = sst [smem:[#allocation26_spill]] %s2249_s6 }
   0x4   :  { %2265 = sst [smem:[#allocation27_spill]] %s2250_s7 }
   0x5   :  { %2266 = sst [smem:[#allocation28_spill]] %s2252_s9 }
   0x6   :  { %16 = vsyncpa [#allocation3], 0 }
   0x7   :  { %18 = vsyncpa [#allocation3 + $0x1], 0 }
   0x8   :  { %19 = vsyncpa [#allocation6], 0 }
   0x9   :  { %21 = vsyncpa [#allocation6 + $0x1], 0 }
   0xa   :  { %22 = vsyncpa [#allocation9], 0 }
   0xb   :  { %23 = vsyncpa [#allocation12], 0 }
   0xc   :  { %24 = vsyncpa [#allocation4], 0 }
   0xd   :  { %26 = vsyncpa [#allocation4 + $0x1], 0  ;;  %s1866_s17 = smov 0   ;;  %s1868_s18 = smov 0  }
   0xe   :  { %s1870_s19 = smov 0   ;;  %s1872_s20 = smov 0  }
   0xf LB: > { %2267 = sst [smem:[#allocation21_spill]] %s1788_s19  ;;  %s1794_s21 = smov [#allocation7]   ;;  %s1792_s20 = sphi %s1872_s20, %s2293_s20   ;;  %s1788_s19 = sphi %s1870_s19, %s2295_s19   ;;  %s1784_s18 = sphi %s1868_s18, %s2297_s18   ;;  %s1780_s17 = sphi %s1866_s17, %s2296_s17  }
  0x10   : > { %s316_s22 = sshll.u32 %s1794_s21, 4  ;;  %s1887_s23 = sadd.s32 4294967295, %s1792_s20   ;;  %s317_s22 = int_to_ptr.vmem [resolvable:$true] %s316_s22 }
  0x11   : > { %p1132_p0 = scmp.ge.s32.totalorder %s1792_s20, 1  ;;  %p2258_p1 = scmp.eq.s32.totalorder %s1887_s23, 0 }
  0x12   : > { %p304_p2 = scmp.lt.s32.totalorder %s1792_s20, 3  ;;  %s1795_s25 = smov [#allocation8]  }
  0x13   : > { %s332_s26 = sshll.u32 %s1795_s25, 4  ;;  %s1796_s28 = smov [#allocation11]   ;;  %s1905_s26 = int_to_ptr.vmem [resolvable:$true] %s332_s26 }
  0x14   : > { %p1892_p3 = pnand %p1132_p0, %p304_p2  ;;  %s361_s29 = sshll.u32 %s1796_s28, 4  ;;  %s1907_s29 = int_to_ptr.vmem [resolvable:$true] %s361_s29 }
  0x15   : > { %s1537_s12 = scalar_lea.vmem %s317_s22, 2048  ;;  %p1545_p11 = scmp.lt.s32.totalorder %s317_s22, %s317_s22 }
  0x16   : > { %s2268_s24 = scalar_select %p1892_p3, 1, 0 }
  0x17   : > { %p1446_p5 = pneg %p1892_p3  ;;  %p1538_p8 = scmp.ne.s32.totalorder %s317_s22, %s1537_s12 }
  0x18   : > { %p1546_p12 = scmp.lt.s32.totalorder %s1537_s12, %s1537_s12 }
  0x19   : > { %p1901_p6 = pnand %p1446_p5, %p2258_p1 }
  0x1a   : > { %p1547_p13 = por %p1546_p12, %p1545_p11 }
  0x1b   : > { %p1911_p7 = pneg %p1901_p6 }
  0x1d   : > { %p1540_p9 = pnand %p1538_p8, %p1911_p7 }
  0x1f   : > { %p1541_p10 = pneg %p1540_p9 }
  0x21   : > { %p1548_p0 = pnand %p1547_p13, %p1541_p10 }
  0x23   : > { %1551 = shalt.err (!%p1548_p0)
}
  0x24   : > { %s1797_s13 = smov 128   ;;  %s1798_s14 = smov 8  }
  0x25   : > { %s2271_s2 = sld [smem:[#allocation24_spill]]  ;;  %s1563_s21 = scalar_lea.vmem %s1905_s26, 2048 }
  0x26   : > { %p1564_p2 = scmp.ne.s32.totalorder %s1905_s26, %s1563_s21  ;;  %p1571_p9 = scmp.lt.s32.totalorder %s1905_s26, %s1905_s26 }
  0x27   : > { %p1572_p10 = scmp.lt.s32.totalorder %s1563_s21, %s1563_s21 }
  0x28   : > { %p1566_p5 = pnand %p1564_p2, %p1911_p7 }
  0x29   : > { %p1573_p11 = por %p1572_p10, %p1571_p9 }
  0x2a   : > { %p1567_p8 = pneg %p1566_p5 }
  0x2b   : > { %1449 = dma.hbm_to_vmem [thread:$0]  (!%p1901_p6), %s2271_s2, 2048, %s317_s22, [#allocation6], %s1797_s13, %s1797_s13, %s1798_s14  }
  0x2c   : > { %p1574_p12 = pnand %p1573_p11, %p1567_p8 }
  0x2e   : > { %1577 = shalt.err (!%p1574_p12)
}
  0x2f   : > { %s2272_s4 = sld [smem:[#allocation25_spill]]  ;;  %s1589_s22 = scalar_lea.vmem %s1907_s29, 2048 }
  0x30   : > { %p1590_p13 = scmp.ne.s32.totalorder %s1907_s29, %s1589_s22  ;;  %p1597_p5 = scmp.lt.s32.totalorder %s1907_s29, %s1907_s29 }
  0x31   : > { %p1598_p8 = scmp.lt.s32.totalorder %s1589_s22, %s1589_s22 }
  0x32   : > { %p1592_p0 = pnand %p1590_p13, %p1911_p7 }
  0x33   : > { %p1599_p9 = por %p1598_p8, %p1597_p5 }
  0x34   : > { %p1593_p2 = pneg %p1592_p0 }
  0x35   : > { %1452 = dma.hbm_to_vmem [thread:$0]  (!%p1901_p6), %s2272_s4, 2048, %s1905_s26, [#allocation9], %s1797_s13, %s1797_s13, %s1798_s14  }
  0x36   : > { %p1600_p10 = pnand %p1599_p9, %p1593_p2 }
  0x38   : > { %1603 = shalt.err (!%p1600_p10)
}
  0x39   : > { %s2273_s7 = sld [smem:[#allocation27_spill]]  ;;  %s1799_s26 = smov [#allocation10]  }
  0x3a   : > { %s348_s16 = sshll.u32 %s1799_s26, 4  ;;  %s1800_s21 = smov [#allocation13]   ;;  %s349_s16 = int_to_ptr.vmem [resolvable:$true] %s348_s16 }
  0x3b   : > { %s377_s25 = sshll.u32 %s1800_s21, 4  ;;  %s1615_s28 = scalar_lea.vmem %s349_s16, 2048  ;;  %s378_s25 = int_to_ptr.vmem [resolvable:$true] %s377_s25 }
  0x3c   : > { %p1616_p11 = scmp.ne.s32.totalorder %s349_s16, %s1615_s28  ;;  %p1623_p0 = scmp.lt.s32.totalorder %s349_s16, %s349_s16 }
  0x3d   : > { %p1624_p2 = scmp.lt.s32.totalorder %s1615_s28, %s1615_s28 }
  0x3e   : > { %p1618_p12 = pnand %p1616_p11, %p1911_p7 }
  0x3f   : > { %1458 = dma.hbm_to_vmem [thread:$0]  (!%p1901_p6), %s2273_s7, 2048, %s1907_s29, [#allocation12], %s1797_s13, %s1797_s13, %s1798_s14  }
  0x40   : > { %p1619_p13 = pneg %p1618_p12  ;;  %p1625_p5 = por %p1624_p2, %p1623_p0 }
  0x42   : > { %p1626_p8 = pnand %p1625_p5, %p1619_p13 }
  0x44   : > { %1629 = shalt.err (!%p1626_p8)
}
  0x45   : > { %s2274_s6 = sld [smem:[#allocation26_spill]]  ;;  %s1641_s12 = scalar_lea.vmem %s378_s25, 2048 }
  0x46   : > { %p1642_p9 = scmp.ne.s32.totalorder %s378_s25, %s1641_s12  ;;  %p1649_p12 = scmp.lt.s32.totalorder %s378_s25, %s378_s25 }
  0x47   : > { %p1650_p0 = scmp.lt.s32.totalorder %s1641_s12, %s1641_s12 }
  0x48   : > { %p1644_p10 = pnand %p1642_p9, %p1911_p7 }
  0x49   : > { %p1651_p13 = por %p1650_p0, %p1649_p12 }
  0x4a   : > { %p1645_p11 = pneg %p1644_p10 }
  0x4b   : > { %1455 = dma.hbm_to_vmem [thread:$0]  (!%p1901_p6), %s2274_s6, 2048, %s349_s16, [#allocation9], %s1797_s13, %s1797_s13, %s1798_s14  }
  0x4c   : > { %p1652_p2 = pnand %p1651_p13, %p1645_p11 }
  0x4e   : > { %1655 = shalt.err (!%p1652_p2)
}
  0x4f   : > { %s2275_s9 = sld [smem:[#allocation28_spill]]  ;;  %s1131_s27 = sadd.s32 4294967294, %s1792_s20  }
  0x50   : > { %s1977_s30 = sadd.s32 1, %s1792_s20   ;;  %s39_s16 = sadd.s32 1, %s1788_s19 }
  0x51   : > { %2276 = sst [smem:[#allocation22_spill]] %s1977_s30  ;;  %s36_s21 = ssub.s32 %s1792_s20, %s1977_s30 }
  0x52   : > { %p46_p7 = scmp.ne.s32.totalorder %s1788_s19, %s1784_s18  ;;  %p37_p5 = scmp.eq.s32.totalorder %s36_s21, 0 }
  0x53   : > { %p47_p8 = scmp.eq.s32.totalorder %s1792_s20, 0  ;;  %p52_p9 = scmp.ne.s32.totalorder %s1784_s18, %s1780_s17 }
  0x54   : > { %p291_p10 = scmp.eq.s32.totalorder %s1887_s23, 1  ;;  %p297_p0 = scmp.eq.s32.totalorder %s1131_s27, 1 }
  0x55   : > { %1461 = dma.hbm_to_vmem [thread:$0]  (!%p1901_p6), %s2275_s9, 2048, %s378_s25, [#allocation12], %s1797_s13, %s1797_s13, %s1798_s14  }
  0x56   : > { %s1989_s28 = scalar_select %p37_p5, %s1788_s19, %s39_s16  }
  0x57   : > { %p48_p11 = por %p47_p8, %p46_p7  ;;  %p1993_p12 = por %p2258_p1, %p52_p9 }
  0x58   : > { %2277 = sst [smem:[#allocation23_spill]] %s1989_s28  ;;  %p1997_p6 = por %p291_p10, %p46_p7 }
  0x59   : > { %s2278_s29 = scalar_select %p1993_p12, 1, 0 }
  0x5a   : > { %s2279_s13 = scalar_select %p1997_p6, 1, 0 }
  0x5b   : > { %p1478_p13 = scmp.lt.s32.totalorder %s1792_s20, 2  ;;  %s394_s14 = sand.u32 1, %s1788_s19  }
  0x5c   : > { %p2003_p2 = por %p297_p0, %p52_p9  ;;  %s2007_s22 = sshll.u32 %s394_s14, 3 }
  0x5d   : > { %s1140_s12 = sshll.u32 %s1792_s20, 7  ;;  %s398_s21 = scalar_lea.vmem [#allocation2], %s2007_s22 }
  0x5e   : > { %s2280_s25 = scalar_select %p2003_p2, 1, 0 }
  0x5f   : > { %s2013_s16 = scalar_lea.hbm %s2243_s0, %s1140_s12  ;;  %s405_s27 = sshll.u32 %s398_s21, 4  ;;  %s406_s27 = int_to_ptr.vmem [resolvable:$true] %s405_s27 }
  0x60   : > { %p2016_p7 = pnand %p1478_p13, %p48_p11  ;;  %s2023_s7 = scalar_lea.hbm %s2244_s1, %s1140_s12 }
  0x61   : > { %s395_s15 = scalar_lea.sflag [#allocation3], %s394_s14  ;;  %s1656_s26 = scalar_lea.hbm %s2013_s16, 128 }
  0x62   : > { %p1657_p5 = scmp.ne.s32.totalorder %s2013_s16, %s1656_s26  ;;  %p1658_p8 = pneg %p2016_p7 }
  0x63   : > { %s1661_s28 = scalar_lea.hbm %s2243_s0, 256  ;;  %p1662_p11 = scmp.lt.s32.totalorder %s2013_s16, %s2243_s0 }
  0x64   : > { %p1659_p9 = pnand %p1658_p8, %p1657_p5  ;;  %p1663_p0 = scmp.lt.s32.totalorder %s1661_s28, %s1656_s26 }
  0x66   : > { %p1660_p10 = pneg %p1659_p9  ;;  %p1664_p13 = por %p1663_p0, %p1662_p11 }
  0x68   : > { %p1665_p4 = pnand %p1664_p13, %p1660_p10 }
  0x6a   : > { %1668 = shalt.err (!%p1665_p4)
}
  0x6b   : > { %s1669_s4 = scalar_lea.vmem %s406_s27, 128  ;;  %s1801_s6 = smov [#allocation2]  }
  0x6c   : > { %p1670_p1 = scmp.ne.s32.totalorder %s406_s27, %s1669_s4  ;;  %s1674_s14 = sshll.u32 %s1801_s6, 4  ;;  %s1675_s14 = int_to_ptr.vmem [resolvable:$false] %s1674_s14 }
  0x6d   : > { %s1676_s9 = scalar_lea.vmem %s1675_s14, 256  ;;  %p1677_p9 = scmp.lt.s32.totalorder %s406_s27, %s1675_s14 }
  0x6e   : > { %p1672_p2 = pnand %p1670_p1, %p1658_p8  ;;  %p1678_p6 = scmp.lt.s32.totalorder %s1676_s9, %s1669_s4 }
  0x70   : > { %p1673_p5 = pneg %p1672_p2  ;;  %p1679_p12 = por %p1678_p6, %p1677_p9 }
  0x72   : > { %p1680_p3 = pnand %p1679_p12, %p1673_p5 }
  0x74   : > { %1683 = shalt.err (!%p1680_p3)
}
  0x75   : > { %1465 = dma.hbm_to_vmem [thread:$0]  (!%p2016_p7), %s2013_s16, 128, %s406_s27, %s395_s15  }
  0x76   : > { %s412_s19 = sand.u32 1, %s1792_s20   ;;  %s416_s30 = scalar_lea.vmem [#allocation5], %s2007_s22 }
  0x77   : > { %s423_s28 = sshll.u32 %s416_s30, 4  ;;  %s413_s12 = scalar_lea.sflag [#allocation6], %s412_s19  ;;  %s424_s28 = int_to_ptr.vmem [resolvable:$true] %s423_s28 }
  0x78   : > { %s1684_s26 = scalar_lea.hbm %s2023_s7, 128  ;;  %s1689_s6 = scalar_lea.hbm %s2244_s1, 256 }
  0x79   : > { %p1685_p1 = scmp.ne.s32.totalorder %s2023_s7, %s1684_s26  ;;  %p1690_p12 = scmp.lt.s32.totalorder %s2023_s7, %s2244_s1 }
  0x7a   : > { %p1691_p6 = scmp.lt.s32.totalorder %s1689_s6, %s1684_s26 }
  0x7b   : > { %p1687_p3 = pnand %p1685_p1, %p1658_p8 }
  0x7c   : > { %p1692_p2 = por %p1691_p6, %p1690_p12 }
  0x7d   : > { %p1688_p4 = pneg %p1687_p3 }
  0x7f   : > { %p1693_p10 = pnand %p1692_p2, %p1688_p4 }
  0x81   : > { %1696 = shalt.err (!%p1693_p10)
}
  0x82   : > { %s1697_s22 = scalar_lea.vmem %s424_s28, 128  ;;  %s1802_s16 = smov [#allocation5]  }
  0x83   : > { %p1698_p11 = scmp.ne.s32.totalorder %s424_s28, %s1697_s22  ;;  %s1702_s27 = sshll.u32 %s1802_s16, 4  ;;  %s1703_s27 = int_to_ptr.vmem [resolvable:$false] %s1702_s27 }
  0x84   : > { %s1704_s15 = scalar_lea.vmem %s1703_s27, 256  ;;  %p1705_p5 = scmp.lt.s32.totalorder %s424_s28, %s1703_s27 }
  0x85   : > { %p1700_p0 = pnand %p1698_p11, %p1658_p8  ;;  %p1706_p9 = scmp.lt.s32.totalorder %s1704_s15, %s1697_s22 }
  0x87   : > { %p1701_p13 = pneg %p1700_p0  ;;  %p1707_p1 = por %p1706_p9, %p1705_p5 }
  0x89   : > { %p1708_p3 = pnand %p1707_p1, %p1701_p13 }
  0x8b   : > { %1711 = shalt.err (!%p1708_p3)
}
  0x8c   : > { %1468 = dma.hbm_to_vmem [thread:$0]  (!%p2016_p7), %s2023_s7, 128, %s424_s28, %s413_s12  }
  0x8d   : > { %p2282_p4 = scmp.ne.s32.totalorder %s2268_s24, 0 }
  0x8e   : > { %s2068_s19 = sand.u32 (!%p2282_p4), 1, %s1784_s18   ;;  %p2283_p8 = scmp.ne.s32.totalorder (!%p2282_p4), %s2278_s29, 0 }
  0x8f   : > { %432 = sbr.rel (%p2282_p4) target bundleno = 802 (0x322), region = 64  ;;  %s2071_s30 = sshll.u32 (!%p2282_p4), %s2068_s19, 3 }
  0x90   : > { %s435_s26 = scalar_lea.sflag (!%p2282_p4), [#allocation3], %s2068_s19  ;;  %s438_s21 = scalar_lea.vmem (!%p2282_p4), [#allocation2], %s2071_s30 }
  0x94   : > { %1755 = dma.done.wait (%p2283_p8), %s435_s26, 128  }
  0x95   : > { %1757 = vsyncadd (%p2283_p8), %s435_s26, 4294967168  ;;  %s443_s2 = sand.u32 1, %s1887_s23   ;;  %s447_s24 = scalar_lea.vmem [#allocation5], %s2071_s30 }
  0x96   : > { %s444_s7 = scalar_lea.sflag [#allocation6], %s443_s2 }
  0x97   : > { %1759 = dma.done.wait (%p2283_p8), %s444_s7, 128  }
  0x98   : > { %1761 = vsyncadd (%p2283_p8), %s444_s7, 4294967168  ;;  %p2284_p7 = scmp.eq.s32.totalorder %s1887_s23, 0 }
  0x9a   : > { %1763 = dma.done.wait (%p2284_p7), [#allocation6], 2048   ;;  %p2285_p12 = pmov %p2284_p7 }
  0x9b   : > { %p2286_p6 = pmov %p2284_p7 }
  0x9c   : > { %1765 = vsyncadd (%p2285_p12), [#allocation6], 4294965248 }
  0x9d   : > { %1767 = dma.done.wait (%p2286_p6), [#allocation9], 4096   ;;  %p2287_p2 = pmov %p2286_p6 }
  0x9f   : > { %1769 = vsyncadd (%p2287_p2), [#allocation9], 4294963200  ;;  %p2288_p10 = pmov %p2287_p2 }
  0xa0   : > { %p2289_p11 = pmov %p2287_p2 }
  0xa1   : > { %1771 = dma.done.wait (%p2288_p10), [#allocation12], 4096  }
  0xa2   : > { %1773 = vsyncadd (%p2289_p11), [#allocation12], 4294963200  ;;  %v1803_v0 = vmov 0.0   ;;  %vm1804_vm0 = vmmov 0   ;;  %v528_v1 = vld [vmem:[#allocation7 + $0x78] sm:$0xff]  ;;  %v527_v3 = vld [vmem:[#allocation7 + $0x70] sm:$0xff] }
  0xa3   : > { %1245 = vmatprep.subr.mxu0 %v1803_v0  ;;  %1280 = vmatprep.subr.mxu1 %v1803_v0  ;;  %v622_v2 = vld [vmem:[#allocation8 + $0x78] sm:$0xff]  ;;  %v621_v4 = vld [vmem:[#allocation8 + $0x70] sm:$0xff]  ;;  %v526_v5 = vld [vmem:[#allocation7 + $0x68] sm:$0xff]  ;;  %s1157_s16 = sshll.u32 %s1887_s23, 7  ;;  %s510_s27 = scalar_lea.vmem [#allocation14], %s2071_s30 }
  0xa4   : > { %1277 = vmatprep.mubr.msk.f32.mxu0 %vm1804_vm0, %v1803_v0  ;;  %1312 = vmatprep.mubr.msk.f32.mxu1 %vm1804_vm0, %v1803_v0  ;;  %v620_v6 = vld [vmem:[#allocation8 + $0x68] sm:$0xff]  ;;  %v525_v7 = vld [vmem:[#allocation7 + $0x60] sm:$0xff]  ;;  %v524_v9 = vld [vmem:[#allocation7 + $0x58] sm:$0xff]  ;;  %s991_s15 = sshll.u32 %s510_s27, 4  ;;  %s989_s2 = scalar_lea.hbm %s2254_s11, %s1157_s16  ;;  %s992_s15 = int_to_ptr.vmem [resolvable:$true] %s991_s15 }
  0xa5   : > { %1246 = vmatpush3.msra.mxu0 %v528_v1  ;;  %1281 = vmatpush3.msra.mxu1 %v622_v2  ;;  %v619_v8 = vld [vmem:[#allocation8 + $0x60] sm:$0xff]  ;;  %v618_v10 = vld [vmem:[#allocation8 + $0x58] sm:$0xff]  ;;  %v523_v11 = vld [vmem:[#allocation7 + $0x50] sm:$0xff]  ;;  %s978_s7 = scalar_lea.sflag [#allocation4], %s2068_s19  ;;  %p2290_p13 = scmp.ne.s32.totalorder %s2279_s13, 0 }
  0xa6   : > { %1247 = vmatprep.subr.mxu0 %v1803_v0  ;;  %1282 = vmatprep.subr.mxu1 %v1803_v0  ;;  %v617_v12 = vld [vmem:[#allocation8 + $0x50] sm:$0xff]  ;;  %v522_v13 = vld [vmem:[#allocation7 + $0x48] sm:$0xff]  ;;  %v521_v15 = vld [vmem:[#allocation7 + $0x40] sm:$0xff]  ;;  %s1805_s29 = smov [#allocation14]  }
  0xa7   : > { %1248 = vmatpush3.msra.mxu0 %v527_v3  ;;  %1283 = vmatpush3.msra.mxu1 %v621_v4  ;;  %v616_v14 = vld [vmem:[#allocation8 + $0x48] sm:$0xff]  ;;  %v615_v16 = vld [vmem:[#allocation8 + $0x40] sm:$0xff]  ;;  %v520_v17 = vld [vmem:[#allocation7 + $0x38] sm:$0xff]  ;;  %s1716_s23 = sshll.u32 %s1805_s29, 4  ;;  %s1717_s23 = int_to_ptr.vmem [resolvable:$false] %s1716_s23 }
  0xa8   : > { %1249 = vmatprep.subr.mxu0 %v1803_v0  ;;  %1284 = vmatprep.subr.mxu1 %v1803_v0  ;;  %v614_v18 = vld [vmem:[#allocation8 + $0x38] sm:$0xff]  ;;  %v519_v19 = vld [vmem:[#allocation7 + $0x30] sm:$0xff]  ;;  %v518_v21 = vld [vmem:[#allocation7 + $0x28] sm:$0xff]  ;;  %s1718_s30 = scalar_lea.vmem %s1717_s23, 256  ;;  %p1719_p1 = scmp.lt.s32.totalorder %s992_s15, %s1717_s23 }
  0xa9   : > { %1250 = vmatpush3.msra.mxu0 %v526_v5  ;;  %1285 = vmatpush3.msra.mxu1 %v620_v6  ;;  %v613_v20 = vld [vmem:[#allocation8 + $0x30] sm:$0xff]  ;;  %v612_v22 = vld [vmem:[#allocation8 + $0x28] sm:$0xff]  ;;  %v517_v23 = vld [vmem:[#allocation7 + $0x20] sm:$0xff] }
  0xaa   : > { %1251 = vmatprep.subr.mxu0 %v1803_v0  ;;  %1286 = vmatprep.subr.mxu1 %v1803_v0  ;;  %v611_v24 = vld [vmem:[#allocation8 + $0x20] sm:$0xff]  ;;  %v516_v25 = vld [vmem:[#allocation7 + $0x18] sm:$0xff]  ;;  %v515_v27 = vld [vmem:[#allocation7 + $0x10] sm:$0xff] }
  0xab   : > { %1252 = vmatpush3.msra.mxu0 %v525_v7  ;;  %1287 = vmatpush3.msra.mxu1 %v619_v8  ;;  %v610_v26 = vld [vmem:[#allocation8 + $0x18] sm:$0xff]  ;;  %v609_v28 = vld [vmem:[#allocation8 + $0x10] sm:$0xff]  ;;  %v514_v29 = vld [vmem:[#allocation7 + $0x8] sm:$0xff] }
  0xac   : > { %1253 = vmatprep.subr.mxu0 %v1803_v0  ;;  %1288 = vmatprep.subr.mxu1 %v1803_v0  ;;  %v608_v30 = vld [vmem:[#allocation8 + $0x8] sm:$0xff]  ;;  %v513_v31 = vld [vmem:[#allocation7] sm:$0xff]  ;;  %v512_v34 = vld [vmem:[%s447_s24] sm:$0xff]  ;;  %s1712_s24 = scalar_lea.vmem %s992_s15, 128 }
  0xad   : > { %1254 = vmatpush3.msra.mxu0 %v524_v9  ;;  %1289 = vmatpush3.msra.mxu1 %v618_v10  ;;  %v607_v32 = vld [vmem:[#allocation8] sm:$0xff]  ;;  %v732_v35 = vld [vmem:[#allocation11 + $0x78] sm:$0xff]  ;;  %v731_v37 = vld [vmem:[#allocation11 + $0x70] sm:$0xff]  ;;  %p1713_p0 = scmp.ne.s32.totalorder %s992_s15, %s1712_s24  ;;  %p1720_p3 = scmp.lt.s32.totalorder %s1718_s30, %s1712_s24 }
  0xae   : > { %1255 = vmatprep.subr.mxu0 %v1803_v0  ;;  %1290 = vmatprep.subr.mxu1 %v1803_v0  ;;  %v2133_v33 = vld [vmem:[%s438_s21] sm:$0xff]  ;;  %v716_v36 = vld [vmem:[#allocation10 + $0x78] sm:$0xff]  ;;  %v715_v38 = vld [vmem:[#allocation10 + $0x70] sm:$0xff] }
  0xaf   : > { %1256 = vmatpush3.msra.mxu0 %v523_v11  ;;  %1291 = vmatpush3.msra.mxu1 %v617_v12  ;;  %v730_v39 = vld [vmem:[#allocation11 + $0x68] sm:$0xff]  ;;  %v729_v41 = vld [vmem:[#allocation11 + $0x60] sm:$0xff]  ;;  %v728_v43 = vld [vmem:[#allocation11 + $0x58] sm:$0xff]  ;;  %p1714_p5 = pnand %p1713_p0, %p2290_p13  ;;  %p1721_p4 = por %p1720_p3, %p1719_p1 }
  0xb0   : > { %1257 = vmatprep.subr.mxu0 %v1803_v0  ;;  %1292 = vmatprep.subr.mxu1 %v1803_v0  ;;  %v714_v40 = vld [vmem:[#allocation10 + $0x68] sm:$0xff]  ;;  %v713_v42 = vld [vmem:[#allocation10 + $0x60] sm:$0xff]  ;;  %v712_v44 = vld [vmem:[#allocation10 + $0x58] sm:$0xff] }
  0xb1   : > { %1258 = vmatpush3.msra.mxu0 %v522_v13  ;;  %1293 = vmatpush3.msra.mxu1 %v616_v14  ;;  %v727_v45 = vld [vmem:[#allocation11 + $0x50] sm:$0xff]  ;;  %v726_v47 = vld [vmem:[#allocation11 + $0x48] sm:$0xff]  ;;  %v725_v49 = vld [vmem:[#allocation11 + $0x40] sm:$0xff]  ;;  %p1715_p9 = pneg %p1714_p5 }
  0xb2   : > { %1259 = vmatprep.subr.mxu0 %v1803_v0  ;;  %1294 = vmatprep.subr.mxu1 %v1803_v0  ;;  %v711_v46 = vld [vmem:[#allocation10 + $0x50] sm:$0xff]  ;;  %v710_v48 = vld [vmem:[#allocation10 + $0x48] sm:$0xff]  ;;  %v709_v50 = vld [vmem:[#allocation10 + $0x40] sm:$0xff] }
  0xb3   : > { %1260 = vmatpush3.msra.mxu0 %v521_v15  ;;  %1295 = vmatpush3.msra.mxu1 %v615_v16  ;;  %v724_v51 = vld [vmem:[#allocation11 + $0x38] sm:$0xff]  ;;  %v723_v53 = vld [vmem:[#allocation11 + $0x30] sm:$0xff]  ;;  %v722_v55 = vld [vmem:[#allocation11 + $0x28] sm:$0xff]  ;;  %p1722_p8 = pnand %p1721_p4, %p1715_p9 }
  0xb4   : > { %1261 = vmatprep.subr.mxu0 %v1803_v0  ;;  %1296 = vmatprep.subr.mxu1 %v1803_v0  ;;  %v708_v52 = vld [vmem:[#allocation10 + $0x38] sm:$0xff]  ;;  %v707_v54 = vld [vmem:[#allocation10 + $0x30] sm:$0xff]  ;;  %v706_v56 = vld [vmem:[#allocation10 + $0x28] sm:$0xff] }
  0xb5   : > { %1262 = vmatpush3.msra.mxu0 %v520_v17  ;;  %1297 = vmatpush3.msra.mxu1 %v614_v18  ;;  %v721_v57 = vld [vmem:[#allocation11 + $0x20] sm:$0xff]  ;;  %v720_v59 = vld [vmem:[#allocation11 + $0x18] sm:$0xff]  ;;  %v719_v61 = vld [vmem:[#allocation11 + $0x10] sm:$0xff] }
  0xb6   : > { %1263 = vmatprep.subr.mxu0 %v1803_v0  ;;  %1298 = vmatprep.subr.mxu1 %v1803_v0  ;;  %v705_v58 = vld [vmem:[#allocation10 + $0x20] sm:$0xff]  ;;  %v704_v60 = vld [vmem:[#allocation10 + $0x18] sm:$0xff]  ;;  %v703_v62 = vld [vmem:[#allocation10 + $0x10] sm:$0xff] }
  0xb7   : > { %1264 = vmatpush3.msra.mxu0 %v519_v19  ;;  %1299 = vmatpush3.msra.mxu1 %v613_v20  ;;  %v718_v63 = vld [vmem:[#allocation11 + $0x8] sm:$0xff]  ;;  %v717_v2 = vld [vmem:[#allocation11] sm:$0xff]  ;;  %v897_v14 = vld [vmem:[#allocation13 + $0x78] sm:$0xff] }
  0xb8   : > { %1265 = vmatprep.subr.mxu0 %v1803_v0  ;;  %1300 = vmatprep.subr.mxu1 %v1803_v0  ;;  %v702_v1 = vld [vmem:[#allocation10 + $0x8] sm:$0xff]  ;;  %v701_v3 = vld [vmem:[#allocation10] sm:$0xff]  ;;  %v896_v15 = vld [vmem:[#allocation13 + $0x70] sm:$0xff] }
  0xb9   : > { %1266 = vmatpush3.msra.mxu0 %v518_v21  ;;  %1301 = vmatpush3.msra.mxu1 %v612_v22  ;;  %v1152_v4 = vld [vmem:[%s2246_s3] ss:$0 sm:$0xff]  ;;  %v895_v16 = vld [vmem:[#allocation13 + $0x68] sm:$0xff]  ;;  %v893_v18 = vld [vmem:[#allocation13 + $0x58] sm:$0xff] }
  0xba   : > { %1267 = vmatprep.subr.mxu0 %v1803_v0  ;;  %1302 = vmatprep.subr.mxu1 %v1803_v0  ;;  %v1153_v5 = vld [vmem:[%s2248_s5] ss:$0 sm:$0xff]  ;;  %v892_v19 = vld [vmem:[#allocation13 + $0x50] sm:$0xff]  ;;  %v891_v20 = vld [vmem:[#allocation13 + $0x48] sm:$0xff] }
  0xbb   : > { %1268 = vmatpush3.msra.mxu0 %v517_v23  ;;  %1303 = vmatpush3.msra.mxu1 %v611_v24  ;;  %v894_v17 = vld [vmem:[#allocation13 + $0x60] sm:$0xff]  ;;  %v889_v22 = vld [vmem:[#allocation13 + $0x38] sm:$0xff]  ;;  %v888_v23 = vld [vmem:[#allocation13 + $0x30] sm:$0xff] }
  0xbc   : > { %1269 = vmatprep.subr.mxu0 %v1803_v0  ;;  %1304 = vmatprep.subr.mxu1 %v1803_v0  ;;  %v890_v21 = vld [vmem:[#allocation13 + $0x40] sm:$0xff]  ;;  %v887_v24 = vld [vmem:[#allocation13 + $0x28] sm:$0xff] }
  0xbd   : > { %1270 = vmatpush3.msra.mxu0 %v516_v25  ;;  %1305 = vmatpush3.msra.mxu1 %v610_v26  ;;  %v886_v25 = vld [vmem:[#allocation13 + $0x20] sm:$0xff]  ;;  %v885_v26 = vld [vmem:[#allocation13 + $0x18] sm:$0xff] }
  0xbe   : > { %1271 = vmatprep.subr.mxu0 %v1803_v0  ;;  %1306 = vmatprep.subr.mxu1 %v1803_v0 }
  0xbf   : > { %1272 = vmatpush3.msra.mxu0 %v515_v27  ;;  %1307 = vmatpush3.msra.mxu1 %v609_v28  ;;  %v884_v27 = vld [vmem:[#allocation13 + $0x10] sm:$0xff]  ;;  %v883_v28 = vld [vmem:[#allocation13 + $0x8] sm:$0xff] }
  0xc0   : > { %1273 = vmatprep.subr.mxu0 %v1803_v0  ;;  %1308 = vmatprep.subr.mxu1 %v1803_v0 }
  0xc1   : > { %1274 = vmatpush3.msra.mxu0 %v514_v29  ;;  %1309 = vmatpush3.msra.mxu1 %v608_v30  ;;  %v882_v29 = vld [vmem:[#allocation13] sm:$0xff] }
  0xc2   : > { %1275 = vmatprep.subr.mxu0 %v1803_v0  ;;  %1310 = vmatprep.subr.mxu1 %v1803_v0 }
  0xc3   : > { %1276 = vmatpush3.msra.mxu0 %v513_v31  ;;  %1311 = vmatpush3.msra.mxu1 %v607_v32  ;;  %v1154_v32 = vld [vmem:[%s2251_s8] ss:$0 sm:$0xff] }
  0xc4   : > { %1278 = vmatmul.mubr.f32.vlgmr.msra.gmra.mxu0 %v2133_v33  ;;  %1313 = vmatmul.mubr.f32.vlgmr.msra.gmra.mxu1 %v512_v34 }
  0xc5   : > { %1315 = vmatprep.subr.mxu0 %v1803_v0  ;;  %1350 = vmatprep.subr.mxu1 %v1803_v0 }
  0xc6   : > { %1316 = vmatpush3.msra.mxu0 %v732_v35  ;;  %1351 = vmatpush3.msra.mxu1 %v716_v36 }
  0xc7   : > { %1317 = vmatprep.subr.mxu0 %v1803_v0  ;;  %1352 = vmatprep.subr.mxu1 %v1803_v0 }
  0xc8   : > { %1318 = vmatpush3.msra.mxu0 %v731_v37  ;;  %1353 = vmatpush3.msra.mxu1 %v715_v38 }
  0xc9   : > { %1319 = vmatprep.subr.mxu0 %v1803_v0  ;;  %1354 = vmatprep.subr.mxu1 %v1803_v0 }
  0xca   : > { %1320 = vmatpush3.msra.mxu0 %v730_v39  ;;  %1355 = vmatpush3.msra.mxu1 %v714_v40 }
  0xcb   : > { %1321 = vmatprep.subr.mxu0 %v1803_v0  ;;  %1356 = vmatprep.subr.mxu1 %v1803_v0 }
  0xcc   : > { %1322 = vmatpush3.msra.mxu0 %v729_v41  ;;  %1357 = vmatpush3.msra.mxu1 %v713_v42 }
  0xcd   : > { %1323 = vmatprep.subr.mxu0 %v1803_v0  ;;  %1358 = vmatprep.subr.mxu1 %v1803_v0 }
  0xce   : > { %1324 = vmatpush3.msra.mxu0 %v728_v43  ;;  %1359 = vmatpush3.msra.mxu1 %v712_v44 }
  0xcf   : > { %1325 = vmatprep.subr.mxu0 %v1803_v0  ;;  %1360 = vmatprep.subr.mxu1 %v1803_v0 }
  0xd0   : > { %1326 = vmatpush3.msra.mxu0 %v727_v45  ;;  %1361 = vmatpush3.msra.mxu1 %v711_v46 }
  0xd1   : > { %1327 = vmatprep.subr.mxu0 %v1803_v0  ;;  %1362 = vmatprep.subr.mxu1 %v1803_v0 }
  0xd2   : > { %1328 = vmatpush3.msra.mxu0 %v726_v47  ;;  %1363 = vmatpush3.msra.mxu1 %v710_v48 }
  0xd3   : > { %1329 = vmatprep.subr.mxu0 %v1803_v0  ;;  %1364 = vmatprep.subr.mxu1 %v1803_v0 }
  0xd4   : > { %1330 = vmatpush3.msra.mxu0 %v725_v49  ;;  %1365 = vmatpush3.msra.mxu1 %v709_v50 }
  0xd5   : > { %1331 = vmatprep.subr.mxu0 %v1803_v0  ;;  %1366 = vmatprep.subr.mxu1 %v1803_v0 }
  0xd6   : > { %1332 = vmatpush3.msra.mxu0 %v724_v51  ;;  %1367 = vmatpush3.msra.mxu1 %v708_v52 }
  0xd7   : > { %1333 = vmatprep.subr.mxu0 %v1803_v0  ;;  %1368 = vmatprep.subr.mxu1 %v1803_v0 }
  0xd8   : > { %1334 = vmatpush3.msra.mxu0 %v723_v53  ;;  %1369 = vmatpush3.msra.mxu1 %v707_v54 }
  0xd9   : > { %1335 = vmatprep.subr.mxu0 %v1803_v0  ;;  %1370 = vmatprep.subr.mxu1 %v1803_v0 }
  0xda   : > { %1336 = vmatpush3.msra.mxu0 %v722_v55  ;;  %1371 = vmatpush3.msra.mxu1 %v706_v56 }
  0xdb   : > { %1337 = vmatprep.subr.mxu0 %v1803_v0  ;;  %1372 = vmatprep.subr.mxu1 %v1803_v0 }
  0xdc   : > { %1338 = vmatpush3.msra.mxu0 %v721_v57  ;;  %1373 = vmatpush3.msra.mxu1 %v705_v58 }
  0xdd   : > { %1339 = vmatprep.subr.mxu0 %v1803_v0  ;;  %1374 = vmatprep.subr.mxu1 %v1803_v0 }
  0xde   : > { %1340 = vmatpush3.msra.mxu0 %v720_v59  ;;  %1375 = vmatpush3.msra.mxu1 %v704_v60 }
  0xdf   : > { %1341 = vmatprep.subr.mxu0 %v1803_v0  ;;  %1376 = vmatprep.subr.mxu1 %v1803_v0 }
  0xe0   : > { %1347 = vmatprep.mubr.msk.f32.mxu0 %vm1804_vm0, %v1803_v0  ;;  %1382 = vmatprep.mubr.msk.f32.mxu1 %vm1804_vm0, %v1803_v0 }
  0xe1   : > { %1342 = vmatpush3.msra.mxu0 %v719_v61  ;;  %1377 = vmatpush3.msra.mxu1 %v703_v62 }
  0xe2   : > { %1343 = vmatprep.subr.mxu0 %v1803_v0  ;;  %1378 = vmatprep.subr.mxu1 %v1803_v0 }
  0xe3   : > { %1344 = vmatpush3.msra.mxu0 %v718_v63  ;;  %1379 = vmatpush3.msra.mxu1 %v702_v1 }
  0xe4   : > { %1345 = vmatprep.subr.mxu0 %v1803_v0  ;;  %1380 = vmatprep.subr.mxu1 %v1803_v0 }
  0xe5   : > { %1346 = vmatpush3.msra.mxu0 %v717_v2  ;;  %1381 = vmatpush3.msra.mxu1 %v701_v3 }
  0xe6   : > { %1385 = vmatprep.subr.mxu0 %v1803_v0 }
 0x184   : > { %v602_v6 = vpop.f32.mrf.mxu0  ;;  %v696_v7 = vpop.f32.mrf.mxu1 }
 0x185   : > { %v603_v8 = vadd.f32 %v1152_v4, %v602_v6  ;;  %v697_v9 = vadd.f32 %v1153_v5, %v696_v7 }
 0x186   : > { %v1279_v10 = vpop.f32.mrf.mxu0  ;;  %v1314_v11 = vpop.f32.mrf.mxu1 }
 0x187   : > { %v606_v12 = vmax.f32 %v603_v8, 0.0  ;;  %v700_v13 = vmax.f32 %v697_v9, 0.0 }
 0x189   : > { %1348 = vmatmul.mubr.f32.vlgmr.msra.gmra.mxu0 %v700_v13  ;;  %1383 = vmatmul.mubr.f32.vlgmr.msra.gmra.mxu1 %v606_v12 }
 0x18a   : > { %1386 = vmatpush3.msra.mxu0 %v897_v14  ;;  %1417 = vmatprep.mubr.msk.f32.mxu0 %vm1804_vm0, %v1803_v0 }
 0x18b   : > { %1387 = vmatprep.subr.mxu0 %v1803_v0 }
 0x18c   : > { %1388 = vmatpush3.msra.mxu0 %v896_v15 }
 0x18d   : > { %1389 = vmatprep.subr.mxu0 %v1803_v0 }
 0x18e   : > { %1390 = vmatpush3.msra.mxu0 %v895_v16 }
 0x18f   : > { %1391 = vmatprep.subr.mxu0 %v1803_v0 }
 0x190   : > { %1392 = vmatpush3.msra.mxu0 %v894_v17 }
 0x191   : > { %1393 = vmatprep.subr.mxu0 %v1803_v0 }
 0x192   : > { %1394 = vmatpush3.msra.mxu0 %v893_v18 }
 0x193   : > { %1395 = vmatprep.subr.mxu0 %v1803_v0 }
 0x194   : > { %1396 = vmatpush3.msra.mxu0 %v892_v19 }
 0x195   : > { %1397 = vmatprep.subr.mxu0 %v1803_v0 }
 0x196   : > { %1398 = vmatpush3.msra.mxu0 %v891_v20 }
 0x197   : > { %1399 = vmatprep.subr.mxu0 %v1803_v0 }
 0x198   : > { %1400 = vmatpush3.msra.mxu0 %v890_v21 }
 0x199   : > { %1401 = vmatprep.subr.mxu0 %v1803_v0 }
 0x19a   : > { %1402 = vmatpush3.msra.mxu0 %v889_v22 }
 0x19b   : > { %1403 = vmatprep.subr.mxu0 %v1803_v0 }
 0x19c   : > { %1404 = vmatpush3.msra.mxu0 %v888_v23 }
 0x19d   : > { %1405 = vmatprep.subr.mxu0 %v1803_v0 }
 0x19e   : > { %1406 = vmatpush3.msra.mxu0 %v887_v24 }
 0x19f   : > { %1407 = vmatprep.subr.mxu0 %v1803_v0 }
 0x1a0   : > { %1408 = vmatpush3.msra.mxu0 %v886_v25 }
 0x1a1   : > { %1409 = vmatprep.subr.mxu0 %v1803_v0 }
 0x1a2   : > { %1410 = vmatpush3.msra.mxu0 %v885_v26 }
 0x1a3   : > { %1411 = vmatprep.subr.mxu0 %v1803_v0 }
 0x1a4   : > { %1412 = vmatpush3.msra.mxu0 %v884_v27 }
 0x1a5   : > { %1413 = vmatprep.subr.mxu0 %v1803_v0 }
 0x1a6   : > { %1414 = vmatpush3.msra.mxu0 %v883_v28 }
 0x1a7   : > { %1415 = vmatprep.subr.mxu0 %v1803_v0  ;;  %v1155_v0 = vld [vmem:[%s2253_s10] ss:$0 sm:$0xff] }
 0x1a8   : > { %1416 = vmatpush3.msra.mxu0 %v882_v29 }
 0x249   : > { %v799_v30 = vpop.f32.mrf.mxu0  ;;  %v869_v31 = vpop.f32.mrf.mxu1 }
 0x24a   : > { %v870_v34 = vadd.f32 %v869_v31, %v799_v30 }
 0x24b   : > { %v1349_v35 = vpop.f32.mrf.mxu0  ;;  %v1384_v36 = vpop.f32.mrf.mxu1 }
 0x24c   : > { %v880_v37 = vadd.f32 %v1154_v32, %v870_v34 }
 0x24e   : > { %v881_v38 = vmax.f32 %v880_v37, 0.0 }
 0x250   : > { %1418 = vmatmul.mubr.f32.vlgmr.msra.gmra.mxu0 %v881_v38 }
 0x310   : > { %v971_v39 = vpop.f32.mrf.mxu0 }
 0x311   : > { %v972_v40 = vadd.f32 %v1155_v0, %v971_v39 }
 0x312   : > { %v1419_v41 = vpop.f32.mrf.mxu0 }
 0x313   : > { %v975_v42 = vadd.f32 %v972_v40, %v2133_v33 }
 0x315   : > { %976 = vst [vmem:[%s510_s27] sm:$0xff] %v975_v42 }
 0x316   : > { %1725 = shalt.err (!%p1722_p8)
}
 0x317   : > { %s1726_s28 = scalar_lea.hbm %s989_s2, 128  ;;  %s1730_s4 = scalar_lea.hbm %s2254_s11, 256 }
 0x318   : > { %p1727_p7 = scmp.ne.s32.totalorder %s989_s2, %s1726_s28  ;;  %p1731_p2 = scmp.lt.s32.totalorder %s989_s2, %s2254_s11 }
 0x319   : > { %p1732_p10 = scmp.lt.s32.totalorder %s1730_s4, %s1726_s28 }
 0x31a   : > { %p1728_p12 = pnand %p1727_p7, %p2290_p13 }
 0x31b   : > { %p1733_p11 = por %p1732_p10, %p1731_p2 }
 0x31c   : > { %p1729_p6 = pneg %p1728_p12 }
 0x31e   : > { %p1734_p0 = pnand %p1733_p11, %p1729_p6 }
 0x320   : > { %1737 = shalt.err (!%p1734_p0)
}
 0x321   : > { %1444 = dma.vmem_to_hbm [thread:$0]  (%p2290_p13), %s992_s15, 128, %s989_s2, %s978_s7  }
 0x322 PF: > { %s1003_s9 = sand.u32 1, %s1780_s17   ;;  %p2291_p5 = scmp.ne.s32.totalorder %s2280_s25, 0 }
 0x323   : > { %p2292_p9 = scmp.ge.s32.totalorder %s1792_s20, 2  ;;  %s1004_s22 = scalar_lea.sflag [#allocation4], %s1003_s9 }
 0x325   : > { %p1470_p1 = pnand %p2292_p9, %p2291_p5 }
 0x327   : > { %p1471_p3 = pneg %p1470_p1 }
 0x329   : > { %1775 = dma.done.wait (%p1471_p3), %s1004_s22, 128  }
 0x32a   : > { %1777 = vsyncadd (%p1471_p3), %s1004_s22, 4294967168  ;;  %s2293_s20 = sld [smem:[#allocation22_spill]]  ;;  %s2296_s17 = smov %s1784_s18 }
 0x32b   : > { %s2294_s16 = sld [smem:[#allocation21_spill]] }
 0x32c   : > { %s2295_s19 = sld [smem:[#allocation23_spill]] }
 0x330   : > { %p29_p4 = scmp.ge.s32.totalorder %s2293_s20, 4  }
 0x331   : > { %s2297_s18 = smov %s2294_s16 }
 0x332   :  { %31 = sbr.rel (!%p29_p4) target bundleno = 15 (0xf), region = 142 }
 0x337   :  { %1009 = vsyncpa [#allocation3], 1 }
 0x338   :  { %1011 = vsyncpa [#allocation3 + $0x1], 1 }
 0x339   :  { %1012 = vsyncpa [#allocation6], 1 }
 0x33a   :  { %1014 = vsyncpa [#allocation6 + $0x1], 1 }
 0x33b   :  { %1015 = vsyncpa [#allocation9], 1 }
 0x33c   :  { %1016 = vsyncpa [#allocation12], 1 }
 0x33d   :  { %1017 = vsyncpa [#allocation4], 1 }
 0x33e   :  { %1019 = vsyncpa [#allocation4 + $0x1], 1 }

</bundles_post_ra>
